<compile_context>
chip_gen: v7x
topology: tpu7x:2x2x1
jax: 0.10.0
libtpu: 0.0.40
codegen_flags: <defaults>
</compile_context>

<pallas_src>
import functools

import jax
import jax.numpy as jnp
from jax.experimental import pallas as pl
from jax.experimental.pallas import tpu as pltpu


# ----------------------------------------------------------------------------
# Fused 2-layer LSTM (batch_first, PyTorch gate order i,f,g,o) + Attention
# ----------------------------------------------------------------------------
def _lstm_attn_kernel(x_ref, wih1_ref, whh1_ref, b1_ref, wih2_ref, whh2_ref,
                      b2_ref, aw1_ref, ab1_ref, aw2_ref, ab2_ref, out_ref,
                      *, seq_len, in_dim):
    B = out_ref.shape[0]
    H = whh1_ref.shape[0]
    T = seq_len

    wih1 = wih1_ref[...]
    whh1 = whh1_ref[...]
    b1 = b1_ref[...]
    wih2 = wih2_ref[...]
    whh2 = whh2_ref[...]
    b2 = b2_ref[...]

    def cell(inp, h, c, wih, whh, b):
        gates = (jnp.dot(inp, wih, preferred_element_type=jnp.float32)
                 + jnp.dot(h, whh, preferred_element_type=jnp.float32) + b)
        # Full-vreg activations (EUP), slice the i/f/g/o quarters afterwards.
        sg = jax.nn.sigmoid(gates)
        th = jnp.tanh(gates)
        i = sg[:, 0:H]
        f = sg[:, H:2 * H]
        o = sg[:, 3 * H:4 * H]
        g = th[:, 2 * H:3 * H]
        c_new = f * c + i * g
        h_new = o * jnp.tanh(c_new)
        return h_new, c_new

    zero = jnp.zeros((B, H), jnp.float32)
    h1, c1, h2, c2 = zero, zero, zero, zero

    hs = []
    # T is small and static: fully unrolled so the scheduler can overlap the
    # two cells' matmuls; no per-step grid overhead, no HBM writeback.
    for t in range(T):
        x_t = x_ref[:, t * in_dim:(t + 1) * in_dim]          # (B, Din)
        h1, c1 = cell(x_t, h1, c1, wih1, whh1, b1)
        h2, c2 = cell(h1, h2, c2, wih2, whh2, b2)
        hs.append(h2)

    # ---- attention epilogue (prefix-softmax context sum) ----
    # scores for every (t, b) row in one batched matmul
    xcat = jnp.concatenate(hs, axis=0)                        # (T*B, H)
    hh = jnp.tanh(jnp.dot(xcat, aw1_ref[...],
                          preferred_element_type=jnp.float32) + ab1_ref[...])
    s = jnp.dot(hh, aw2_ref[...],
                preferred_element_type=jnp.float32) + ab2_ref[...]   # (T*B, 1)

    # Global-max stabilization: subtracting one constant from every score is
    # exact for the prefix-softmax ratios e_s / Z_t but keeps exp() bounded.
    e = jnp.exp(s - jnp.max(s, keepdims=True))                # (T*B, 1)

    # ctx_b = sum_s e_{s,b} * (sum_{t>=s} 1/Z_{t,b}) * x_{s,b}
    #   with Z_{t,b} = sum_{u<=t} e_{u,b}.  Short static loops over T.
    z = jnp.zeros((B, 1), jnp.float32)
    invs = []
    for t in range(T):
        z = z + e[t * B:(t + 1) * B, :]
        invs.append(pl.reciprocal(z, approx=True))            # EUP slot

    ctx = jnp.zeros((B, H), jnp.float32)
    rev = jnp.zeros((B, 1), jnp.float32)
    for t in range(T - 1, -1, -1):
        rev = rev + invs[t]                                   # sum_{u>=t} 1/Z_u
        ctx = ctx + (e[t * B:(t + 1) * B, :] * rev) * hs[t]
    out_ref[...] = ctx


def lstm_attn_forward(x_btd, lstm_p, attn_p):
    """x_btd: (B, T, Din) -> (B, H) fused LSTM(2 layers) + attention context."""
    B, T, Din = x_btd.shape
    H = lstm_p["whh1"].shape[0]
    x2 = x_btd.reshape(B, T * Din)            # row-major collapse, no data movement
    kernel = functools.partial(_lstm_attn_kernel, seq_len=T, in_dim=Din)
    return pl.pallas_call(
        kernel,
        out_shape=jax.ShapeDtypeStruct((B, H), jnp.float32),
        in_specs=[pl.BlockSpec(memory_space=pltpu.MemorySpace.VMEM)] * 11,
        out_specs=pl.BlockSpec(memory_space=pltpu.MemorySpace.VMEM),
    )(x2, lstm_p["wih1"], lstm_p["whh1"], lstm_p["b1"],
      lstm_p["wih2"], lstm_p["whh2"], lstm_p["b2"],
      attn_p["w1"], attn_p["b1"], attn_p["w2"], attn_p["b2"])


# ----------------------------------------------------------------------------
# Fused 4x GCNConv (dense: out = A_hat @ (X @ W) + b) + sigmoid MLP head
# ----------------------------------------------------------------------------
def _gcn_head_kernel(ap_ref, at_ref, x_ref, g_ref,
                     wp1_ref, bp1_ref, wp2_ref, bp2_ref,
                     wt1_ref, bt1_ref, wt2_ref, bt2_ref,
                     wmpg_ref, wmtr_ref, bm_ref, out_ref):
    def dot(a, b):
        return jnp.dot(a, b, preferred_element_type=jnp.float32)

    x = x_ref[...]
    ap = ap_ref[...]
    at = at_ref[...]

    pg = dot(ap, dot(x, wp1_ref[...])) + bp1_ref[...]
    pg = dot(ap, dot(pg, wp2_ref[...])) + bp2_ref[...]
    tg = dot(at, dot(x, wt1_ref[...])) + bt1_ref[...]
    tg = dot(at, dot(tg, wt2_ref[...])) + bt2_ref[...]

    trend = jax.lax.dot_general(tg, g_ref[...],
                                dimension_numbers=(((1,), (1,)), ((), ())),
                                preferred_element_type=jnp.float32)   # (N, 5)
    # concat([pg, trend]) @ W_mlp folded into two matmuls against the split W
    logits = dot(pg, wmpg_ref[...]) + dot(trend, wmtr_ref[...]) + bm_ref[...]
    out_ref[...] = jax.nn.sigmoid(logits)


def gcn_head_forward(a_p, a_t, x, g, params):
    n = x.shape[0]
    return pl.pallas_call(
        _gcn_head_kernel,
        out_shape=jax.ShapeDtypeStruct((n, 1), jnp.float32),
        in_specs=[pl.BlockSpec(memory_space=pltpu.MemorySpace.VMEM)] * 15,
        out_specs=pl.BlockSpec(memory_space=pltpu.MemorySpace.VMEM),
    )(a_p, a_t, x, g,
      params["gcn_p1_w"], params["gcn_p1_b"], params["gcn_p2_w"], params["gcn_p2_b"],
      params["gcn_t1_w"], params["gcn_t1_b"], params["gcn_t2_w"], params["gcn_t2_b"],
      params["mlp_w_pg"], params["mlp_w_tr"], params["mlp_b"])


# ----------------------------------------------------------------------------
# GCN symmetric normalization (self-loops weight 1, D^-1/2 (A+I) D^-1/2)
# TODO(synk): edge-list scatter-add to dense adjacency stays in plain JAX; a
# data-dependent scatter kernel is not worth a Pallas launch at this size.
# ----------------------------------------------------------------------------
def normalized_adj(edge_index, edge_weight, n):
    a = jnp.zeros((n, n), jnp.float32)
    a = a.at[edge_index[1], edge_index[0]].add(edge_weight)   # message src -> dst
    a = a + jnp.eye(n, dtype=jnp.float32)                     # self loops first,
    deg = jnp.sum(a, axis=1)                                  # then degrees (PyG order)
    dinv = jnp.where(deg > 0, 1.0 / jnp.sqrt(deg), 0.0)
    return dinv[:, None] * a * dinv[None, :]


# ----------------------------------------------------------------------------
# Full GFS forward (3 pallas_calls total)
# ----------------------------------------------------------------------------
def gfs_forward(params, price, global_trend, price_graph, trend_graph):
    n = price.shape[0]
    x = lstm_attn_forward(price, params["lstm_p"], params["attn_p"])          # (N, F)
    g = lstm_attn_forward(global_trend, params["lstm_t"], params["attn_t"])   # (5, F)
    a_p = normalized_adj(price_graph[0], price_graph[1], n)
    a_t = normalized_adj(trend_graph[0], trend_graph[1], n)
    return gcn_head_forward(a_p, a_t, x, g, params)


# ----------------------------------------------------------------------------
# Deterministic parameter init (shapes from GFS.__init__)
# ----------------------------------------------------------------------------
def init_gfs_params(key, price_dim, trend_dim, feat):
    ks = iter(jax.random.split(key, 48))

    def nrm(shape, scale=0.2):
        return scale * jax.random.normal(next(ks), shape, jnp.float32)

    def lstm_p(din):
        return dict(wih1=nrm((din, 4 * feat)), whh1=nrm((feat, 4 * feat)),
                    b1=nrm((1, 4 * feat), 0.05),
                    wih2=nrm((feat, 4 * feat)), whh2=nrm((feat, 4 * feat)),
                    b2=nrm((1, 4 * feat), 0.05))

    def attn_p():
        return dict(w1=nrm((feat, feat)), b1=jnp.zeros((1, feat), jnp.float32),
                    w2=nrm((feat, 1)), b2=jnp.zeros((1, 1), jnp.float32))

    return dict(
        lstm_p=lstm_p(price_dim), lstm_t=lstm_p(trend_dim),
        attn_p=attn_p(), attn_t=attn_p(),
        gcn_p1_w=nrm((feat, 16)), gcn_p1_b=jnp.zeros((1, 16), jnp.float32),
        gcn_p2_w=nrm((16, feat)), gcn_p2_b=jnp.zeros((1, feat), jnp.float32),
        gcn_t1_w=nrm((feat, 16)), gcn_t1_b=jnp.zeros((1, 16), jnp.float32),
        gcn_t2_w=nrm((16, feat)), gcn_t2_b=jnp.zeros((1, feat), jnp.float32),
        mlp_w_pg=nrm((feat, 1)), mlp_w_tr=nrm((5, 1)),
        mlp_b=jnp.zeros((1, 1), jnp.float32),
    )


# ----------------------------------------------------------------------------
# Pure-JAX reference (for correctness check)
# ----------------------------------------------------------------------------
def _ref_lstm2(x, p):
    H = p["whh1"].shape[0]

    def one(inp, h, c, wih, whh, b):
        g = inp @ wih + h @ whh + b
        i = jax.nn.sigmoid(g[:, :H]); f = jax.nn.sigmoid(g[:, H:2 * H])
        gg = jnp.tanh(g[:, 2 * H:3 * H]); o = jax.nn.sigmoid(g[:, 3 * H:])
        c = f * c + i * gg
        return o * jnp.tanh(c), c

    def step(carry, x_t):
        h1, c1, h2, c2 = carry
        h1, c1 = one(x_t, h1, c1, p["wih1"], p["whh1"], p["b1"])
        h2, c2 = one(h1, h2, c2, p["wih2"], p["whh2"], p["b2"])
        return (h1, c1, h2, c2), h2

    B = x.shape[0]
    init = tuple(jnp.zeros((B, H), jnp.float32) for _ in range(4))
    _, ys = jax.lax.scan(step, init, jnp.transpose(x, (1, 0, 2)))
    return jnp.transpose(ys, (1, 0, 2))


def _ref_attention(x, p):
    s = jnp.tanh(x @ p["w1"] + p["b1"]) @ p["w2"] + p["b2"]
    B, T, D = x.shape
    ctx = jnp.zeros((B, D), jnp.float32)
    for t in range(T):
        w = jax.nn.softmax(s[:, :t + 1, :], axis=1)
        ctx = ctx + jnp.sum(w * x[:, :t + 1, :], axis=1)
    return ctx


def _ref_forward(params, price, global_trend, price_graph, trend_graph):
    n = price.shape[0]
    x = _ref_attention(_ref_lstm2(price, params["lstm_p"]), params["attn_p"])
    g = _ref_attention(_ref_lstm2(global_trend, params["lstm_t"]), params["attn_t"])
    a_p = normalized_adj(price_graph[0], price_graph[1], n)
    a_t = normalized_adj(trend_graph[0], trend_graph[1], n)
    pg = a_p @ (x @ params["gcn_p1_w"]) + params["gcn_p1_b"]
    pg = a_p @ (pg @ params["gcn_p2_w"]) + params["gcn_p2_b"]
    tg = a_t @ (x @ params["gcn_t1_w"]) + params["gcn_t1_b"]
    tg = a_t @ (tg @ params["gcn_t2_w"]) + params["gcn_t2_b"]
    final = jnp.concatenate([pg, tg @ g.T], axis=1)
    return jax.nn.sigmoid(final @ jnp.concatenate([params["mlp_w_pg"], params["mlp_w_tr"]], 0)
                          + params["mlp_b"])


if __name__ == "__main__":
    N, SEQ, PRICE_DIM, TREND_DIM, FEAT, N_TREND = 8, 8, 4, 3, 32, 5
    key = jax.random.PRNGKey(0)
    k_price, k_trend, k_w, k_params = jax.random.split(key, 4)

    price = jax.random.normal(k_price, (N, SEQ, PRICE_DIM), jnp.float32)
    global_trend = jax.random.normal(k_trend, (N_TREND, SEQ, TREND_DIM), jnp.float32)

    # simple deterministic graphs over the N nodes (ring and skip-2 ring)
    src = jnp.arange(N, dtype=jnp.int32)
    p_edge_index = jnp.stack([jnp.concatenate([src, (src + 1) % N]),
                              jnp.concatenate([(src + 1) % N, src])])
    t_edge_index = jnp.stack([jnp.concatenate([src, (src + 2) % N]),
                              jnp.concatenate([(src + 2) % N, src])])
    p_weights = 0.5 + jax.random.uniform(k_w, (2 * N,), jnp.float32)
    t_weights = jnp.ones((2 * N,), jnp.float32)

    params = init_gfs_params(k_params, PRICE_DIM, TREND_DIM, FEAT)

    out = gfs_forward(params, price, global_trend,
                      (p_edge_index, p_weights, None),
                      (t_edge_index, t_weights, None))
    out = jax.block_until_ready(out)

    ref = _ref_forward(params, price, global_trend,
                       (p_edge_index, p_weights, None),
                       (t_edge_index, t_weights, None))
    assert out.shape == (N, 1), out.shape
    assert bool(jnp.all(jnp.isfinite(out)))
    assert bool(jnp.allclose(out, ref, atol=2e-3, rtol=2e-3)), (out, ref)
    print("KERNEL_OK")
</pallas_src>

<mosaic_0001>
module attributes {stable_mosaic.version = 11 : i64} {
  func.func @_lstm_attn_kernel(%arg0: memref<8x32xf32, #tpu.memory_space<vmem>>, %arg1: memref<4x128xf32, #tpu.memory_space<vmem>>, %arg2: memref<32x128xf32, #tpu.memory_space<vmem>>, %arg3: memref<1x128xf32, #tpu.memory_space<vmem>>, %arg4: memref<32x128xf32, #tpu.memory_space<vmem>>, %arg5: memref<32x128xf32, #tpu.memory_space<vmem>>, %arg6: memref<1x128xf32, #tpu.memory_space<vmem>>, %arg7: memref<32x32xf32, #tpu.memory_space<vmem>>, %arg8: memref<1x32xf32, #tpu.memory_space<vmem>>, %arg9: memref<32x1xf32, #tpu.memory_space<vmem>>, %arg10: memref<1x1xf32, #tpu.memory_space<vmem>>, %arg11: memref<8x32xf32, #tpu.memory_space<vmem>>) attributes {dimension_semantics = [], scalar_prefetch = 0 : i64, scratch_operands = 0 : i64, tpu.core_type = #tpu.core_type<tc>} {
    %c0 = arith.constant 0 : index
    %c0_0 = arith.constant 0 : index
    %0 = vector.load %arg1[%c0, %c0_0] : memref<4x128xf32, #tpu.memory_space<vmem>>, vector<4x128xf32>
    %c0_1 = arith.constant 0 : index
    %c0_2 = arith.constant 0 : index
    %1 = vector.load %arg2[%c0_1, %c0_2] : memref<32x128xf32, #tpu.memory_space<vmem>>, vector<32x128xf32>
    %c0_3 = arith.constant 0 : index
    %c0_4 = arith.constant 0 : index
    %2 = vector.load %arg3[%c0_3, %c0_4] : memref<1x128xf32, #tpu.memory_space<vmem>>, vector<1x128xf32>
    %c0_5 = arith.constant 0 : index
    %c0_6 = arith.constant 0 : index
    %3 = vector.load %arg4[%c0_5, %c0_6] : memref<32x128xf32, #tpu.memory_space<vmem>>, vector<32x128xf32>
    %c0_7 = arith.constant 0 : index
    %c0_8 = arith.constant 0 : index
    %4 = vector.load %arg5[%c0_7, %c0_8] : memref<32x128xf32, #tpu.memory_space<vmem>>, vector<32x128xf32>
    %c0_9 = arith.constant 0 : index
    %c0_10 = arith.constant 0 : index
    %5 = vector.load %arg6[%c0_9, %c0_10] : memref<1x128xf32, #tpu.memory_space<vmem>>, vector<1x128xf32>
    %cst = arith.constant 0.000000e+00 : f32
    %6 = vector.broadcast %cst : f32 to vector<8x32xf32>
    %c0_11 = arith.constant 0 : index
    %c0_12 = arith.constant 0 : index
    %7 = vector.load %arg0[%c0_11, %c0_12] : memref<8x32xf32, #tpu.memory_space<vmem>>, vector<8x4xf32>
    %cst_13 = arith.constant dense<0.000000e+00> : vector<8x128xf32>
    %8 = tpu.matmul %7, %0, %cst_13 {dimension_numbers = #tpu.dot_dimension_numbers<[1], [0], [0], [1], [0, 0, 1, 1], [], []>} : vector<8x4xf32>, vector<4x128xf32>, vector<8x128xf32> -> vector<8x128xf32>
    %cst_14 = arith.constant dense<0.000000e+00> : vector<8x128xf32>
    %9 = tpu.matmul %6, %1, %cst_14 {dimension_numbers = #tpu.dot_dimension_numbers<[1], [0], [0], [1], [0, 0, 1, 1], [], []>} : vector<8x32xf32>, vector<32x128xf32>, vector<8x128xf32> -> vector<8x128xf32>
    %10 = arith.addf %8, %9 : vector<8x128xf32>
    %11 = vector.broadcast %2 : vector<1x128xf32> to vector<8x128xf32>
    %12 = arith.addf %10, %11 : vector<8x128xf32>
    %13 = arith.negf %12 : vector<8x128xf32>
    %14 = math.exp %13 : vector<8x128xf32>
    %cst_15 = arith.constant 1.000000e+00 : f32
    %15 = vector.broadcast %cst_15 : f32 to vector<8x128xf32>
    %16 = arith.addf %15, %14 : vector<8x128xf32>
    %17 = arith.divf %15, %16 : vector<8x128xf32>
    %18 = math.tanh %12 : vector<8x128xf32>
    %19 = vector.extract_strided_slice %17 {offsets = [0, 0], sizes = [8, 32], strides = [1, 1]} : vector<8x128xf32> to vector<8x32xf32>
    %20 = vector.extract_strided_slice %17 {offsets = [0, 32], sizes = [8, 32], strides = [1, 1]} : vector<8x128xf32> to vector<8x32xf32>
    %21 = vector.extract_strided_slice %17 {offsets = [0, 96], sizes = [8, 32], strides = [1, 1]} : vector<8x128xf32> to vector<8x32xf32>
    %22 = vector.extract_strided_slice %18 {offsets = [0, 64], sizes = [8, 32], strides = [1, 1]} : vector<8x128xf32> to vector<8x32xf32>
    %23 = arith.mulf %20, %6 : vector<8x32xf32>
    %24 = arith.mulf %19, %22 : vector<8x32xf32>
    %25 = arith.addf %23, %24 : vector<8x32xf32>
    %26 = math.tanh %25 : vector<8x32xf32>
    %27 = arith.mulf %21, %26 : vector<8x32xf32>
    %cst_16 = arith.constant dense<0.000000e+00> : vector<8x128xf32>
    %28 = tpu.matmul %27, %3, %cst_16 {dimension_numbers = #tpu.dot_dimension_numbers<[1], [0], [0], [1], [0, 0, 1, 1], [], []>} : vector<8x32xf32>, vector<32x128xf32>, vector<8x128xf32> -> vector<8x128xf32>
    %cst_17 = arith.constant dense<0.000000e+00> : vector<8x128xf32>
    %29 = tpu.matmul %6, %4, %cst_17 {dimension_numbers = #tpu.dot_dimension_numbers<[1], [0], [0], [1], [0, 0, 1, 1], [], []>} : vector<8x32xf32>, vector<32x128xf32>, vector<8x128xf32> -> vector<8x128xf32>
    %30 = arith.addf %28, %29 : vector<8x128xf32>
    %31 = vector.broadcast %5 : vector<1x128xf32> to vector<8x128xf32>
    %32 = arith.addf %30, %31 : vector<8x128xf32>
    %33 = arith.negf %32 : vector<8x128xf32>
    %34 = math.exp %33 : vector<8x128xf32>
    %cst_18 = arith.constant 1.000000e+00 : f32
    %35 = vector.broadcast %cst_18 : f32 to vector<8x128xf32>
    %36 = arith.addf %35, %34 : vector<8x128xf32>
    %37 = arith.divf %35, %36 : vector<8x128xf32>
    %38 = math.tanh %32 : vector<8x128xf32>
    %39 = vector.extract_strided_slice %37 {offsets = [0, 0], sizes = [8, 32], strides = [1, 1]} : vector<8x128xf32> to vector<8x32xf32>
    %40 = vector.extract_strided_slice %37 {offsets = [0, 32], sizes = [8, 32], strides = [1, 1]} : vector<8x128xf32> to vector<8x32xf32>
    %41 = vector.extract_strided_slice %37 {offsets = [0, 96], sizes = [8, 32], strides = [1, 1]} : vector<8x128xf32> to vector<8x32xf32>
    %42 = vector.extract_strided_slice %38 {offsets = [0, 64], sizes = [8, 32], strides = [1, 1]} : vector<8x128xf32> to vector<8x32xf32>
    %43 = arith.mulf %40, %6 : vector<8x32xf32>
    %44 = arith.mulf %39, %42 : vector<8x32xf32>
    %45 = arith.addf %43, %44 : vector<8x32xf32>
    %46 = math.tanh %45 : vector<8x32xf32>
    %47 = arith.mulf %41, %46 : vector<8x32xf32>
    %c0_19 = arith.constant 0 : index
    %c4 = arith.constant 4 : index
    %48 = vector.load %arg0[%c0_19, %c4] : memref<8x32xf32, #tpu.memory_space<vmem>>, vector<8x4xf32>
    %cst_20 = arith.constant dense<0.000000e+00> : vector<8x128xf32>
    %49 = tpu.matmul %48, %0, %cst_20 {dimension_numbers = #tpu.dot_dimension_numbers<[1], [0], [0], [1], [0, 0, 1, 1], [], []>} : vector<8x4xf32>, vector<4x128xf32>, vector<8x128xf32> -> vector<8x128xf32>
    %cst_21 = arith.constant dense<0.000000e+00> : vector<8x128xf32>
    %50 = tpu.matmul %27, %1, %cst_21 {dimension_numbers = #tpu.dot_dimension_numbers<[1], [0], [0], [1], [0, 0, 1, 1], [], []>} : vector<8x32xf32>, vector<32x128xf32>, vector<8x128xf32> -> vector<8x128xf32>
    %51 = arith.addf %49, %50 : vector<8x128xf32>
    %52 = vector.broadcast %2 : vector<1x128xf32> to vector<8x128xf32>
    %53 = arith.addf %51, %52 : vector<8x128xf32>
    %54 = arith.negf %53 : vector<8x128xf32>
    %55 = math.exp %54 : vector<8x128xf32>
    %cst_22 = arith.constant 1.000000e+00 : f32
    %56 = vector.broadcast %cst_22 : f32 to vector<8x128xf32>
    %57 = arith.addf %56, %55 : vector<8x128xf32>
    %58 = arith.divf %56, %57 : vector<8x128xf32>
    %59 = math.tanh %53 : vector<8x128xf32>
    %60 = vector.extract_strided_slice %58 {offsets = [0, 0], sizes = [8, 32], strides = [1, 1]} : vector<8x128xf32> to vector<8x32xf32>
    %61 = vector.extract_strided_slice %58 {offsets = [0, 32], sizes = [8, 32], strides = [1, 1]} : vector<8x128xf32> to vector<8x32xf32>
    %62 = vector.extract_strided_slice %58 {offsets = [0, 96], sizes = [8, 32], strides = [1, 1]} : vector<8x128xf32> to vector<8x32xf32>
    %63 = vector.extract_strided_slice %59 {offsets = [0, 64], sizes = [8, 32], strides = [1, 1]} : vector<8x128xf32> to vector<8x32xf32>
    %64 = arith.mulf %61, %25 : vector<8x32xf32>
    %65 = arith.mulf %60, %63 : vector<8x32xf32>
    %66 = arith.addf %64, %65 : vector<8x32xf32>
    %67 = math.tanh %66 : vector<8x32xf32>
    %68 = arith.mulf %62, %67 : vector<8x32xf32>
    %cst_23 = arith.constant dense<0.000000e+00> : vector<8x128xf32>
    %69 = tpu.matmul %68, %3, %cst_23 {dimension_numbers = #tpu.dot_dimension_numbers<[1], [0], [0], [1], [0, 0, 1, 1], [], []>} : vector<8x32xf32>, vector<32x128xf32>, vector<8x128xf32> -> vector<8x128xf32>
    %cst_24 = arith.constant dense<0.000000e+00> : vector<8x128xf32>
    %70 = tpu.matmul %47, %4, %cst_24 {dimension_numbers = #tpu.dot_dimension_numbers<[1], [0], [0], [1], [0, 0, 1, 1], [], []>} : vector<8x32xf32>, vector<32x128xf32>, vector<8x128xf32> -> vector<8x128xf32>
    %71 = arith.addf %69, %70 : vector<8x128xf32>
    %72 = vector.broadcast %5 : vector<1x128xf32> to vector<8x128xf32>
    %73 = arith.addf %71, %72 : vector<8x128xf32>
    %74 = arith.negf %73 : vector<8x128xf32>
    %75 = math.exp %74 : vector<8x128xf32>
    %cst_25 = arith.constant 1.000000e+00 : f32
    %76 = vector.broadcast %cst_25 : f32 to vector<8x128xf32>
    %77 = arith.addf %76, %75 : vector<8x128xf32>
    %78 = arith.divf %76, %77 : vector<8x128xf32>
    %79 = math.tanh %73 : vector<8x128xf32>
    %80 = vector.extract_strided_slice %78 {offsets = [0, 0], sizes = [8, 32], strides = [1, 1]} : vector<8x128xf32> to vector<8x32xf32>
    %81 = vector.extract_strided_slice %78 {offsets = [0, 32], sizes = [8, 32], strides = [1, 1]} : vector<8x128xf32> to vector<8x32xf32>
    %82 = vector.extract_strided_slice %78 {offsets = [0, 96], sizes = [8, 32], strides = [1, 1]} : vector<8x128xf32> to vector<8x32xf32>
    %83 = vector.extract_strided_slice %79 {offsets = [0, 64], sizes = [8, 32], strides = [1, 1]} : vector<8x128xf32> to vector<8x32xf32>
    %84 = arith.mulf %81, %45 : vector<8x32xf32>
    %85 = arith.mulf %80, %83 : vector<8x32xf32>
    %86 = arith.addf %84, %85 : vector<8x32xf32>
    %87 = math.tanh %86 : vector<8x32xf32>
    %88 = arith.mulf %82, %87 : vector<8x32xf32>
    %c0_26 = arith.constant 0 : index
    %c8 = arith.constant 8 : index
    %89 = vector.load %arg0[%c0_26, %c8] : memref<8x32xf32, #tpu.memory_space<vmem>>, vector<8x4xf32>
    %cst_27 = arith.constant dense<0.000000e+00> : vector<8x128xf32>
    %90 = tpu.matmul %89, %0, %cst_27 {dimension_numbers = #tpu.dot_dimension_numbers<[1], [0], [0], [1], [0, 0, 1, 1], [], []>} : vector<8x4xf32>, vector<4x128xf32>, vector<8x128xf32> -> vector<8x128xf32>
    %cst_28 = arith.constant dense<0.000000e+00> : vector<8x128xf32>
    %91 = tpu.matmul %68, %1, %cst_28 {dimension_numbers = #tpu.dot_dimension_numbers<[1], [0], [0], [1], [0, 0, 1, 1], [], []>} : vector<8x32xf32>, vector<32x128xf32>, vector<8x128xf32> -> vector<8x128xf32>
    %92 = arith.addf %90, %91 : vector<8x128xf32>
    %93 = vector.broadcast %2 : vector<1x128xf32> to vector<8x128xf32>
    %94 = arith.addf %92, %93 : vector<8x128xf32>
    %95 = arith.negf %94 : vector<8x128xf32>
    %96 = math.exp %95 : vector<8x128xf32>
    %cst_29 = arith.constant 1.000000e+00 : f32
    %97 = vector.broadcast %cst_29 : f32 to vector<8x128xf32>
    %98 = arith.addf %97, %96 : vector<8x128xf32>
    %99 = arith.divf %97, %98 : vector<8x128xf32>
    %100 = math.tanh %94 : vector<8x128xf32>
    %101 = vector.extract_strided_slice %99 {offsets = [0, 0], sizes = [8, 32], strides = [1, 1]} : vector<8x128xf32> to vector<8x32xf32>
    %102 = vector.extract_strided_slice %99 {offsets = [0, 32], sizes = [8, 32], strides = [1, 1]} : vector<8x128xf32> to vector<8x32xf32>
    %103 = vector.extract_strided_slice %99 {offsets = [0, 96], sizes = [8, 32], strides = [1, 1]} : vector<8x128xf32> to vector<8x32xf32>
    %104 = vector.extract_strided_slice %100 {offsets = [0, 64], sizes = [8, 32], strides = [1, 1]} : vector<8x128xf32> to vector<8x32xf32>
    %105 = arith.mulf %102, %66 : vector<8x32xf32>
    %106 = arith.mulf %101, %104 : vector<8x32xf32>
    %107 = arith.addf %105, %106 : vector<8x32xf32>
    %108 = math.tanh %107 : vector<8x32xf32>
    %109 = arith.mulf %103, %108 : vector<8x32xf32>
    %cst_30 = arith.constant dense<0.000000e+00> : vector<8x128xf32>
    %110 = tpu.matmul %109, %3, %cst_30 {dimension_numbers = #tpu.dot_dimension_numbers<[1], [0], [0], [1], [0, 0, 1, 1], [], []>} : vector<8x32xf32>, vector<32x128xf32>, vector<8x128xf32> -> vector<8x128xf32>
    %cst_31 = arith.constant dense<0.000000e+00> : vector<8x128xf32>
    %111 = tpu.matmul %88, %4, %cst_31 {dimension_numbers = #tpu.dot_dimension_numbers<[1], [0], [0], [1], [0, 0, 1, 1], [], []>} : vector<8x32xf32>, vector<32x128xf32>, vector<8x128xf32> -> vector<8x128xf32>
    %112 = arith.addf %110, %111 : vector<8x128xf32>
    %113 = vector.broadcast %5 : vector<1x128xf32> to vector<8x128xf32>
    %114 = arith.addf %112, %113 : vector<8x128xf32>
    %115 = arith.negf %114 : vector<8x128xf32>
    %116 = math.exp %115 : vector<8x128xf32>
    %cst_32 = arith.constant 1.000000e+00 : f32
    %117 = vector.broadcast %cst_32 : f32 to vector<8x128xf32>
    %118 = arith.addf %117, %116 : vector<8x128xf32>
    %119 = arith.divf %117, %118 : vector<8x128xf32>
    %120 = math.tanh %114 : vector<8x128xf32>
    %121 = vector.extract_strided_slice %119 {offsets = [0, 0], sizes = [8, 32], strides = [1, 1]} : vector<8x128xf32> to vector<8x32xf32>
    %122 = vector.extract_strided_slice %119 {offsets = [0, 32], sizes = [8, 32], strides = [1, 1]} : vector<8x128xf32> to vector<8x32xf32>
    %123 = vector.extract_strided_slice %119 {offsets = [0, 96], sizes = [8, 32], strides = [1, 1]} : vector<8x128xf32> to vector<8x32xf32>
    %124 = vector.extract_strided_slice %120 {offsets = [0, 64], sizes = [8, 32], strides = [1, 1]} : vector<8x128xf32> to vector<8x32xf32>
    %125 = arith.mulf %122, %86 : vector<8x32xf32>
    %126 = arith.mulf %121, %124 : vector<8x32xf32>
    %127 = arith.addf %125, %126 : vector<8x32xf32>
    %128 = math.tanh %127 : vector<8x32xf32>
    %129 = arith.mulf %123, %128 : vector<8x32xf32>
    %c0_33 = arith.constant 0 : index
    %c12 = arith.constant 12 : index
    %130 = vector.load %arg0[%c0_33, %c12] : memref<8x32xf32, #tpu.memory_space<vmem>>, vector<8x4xf32>
    %cst_34 = arith.constant dense<0.000000e+00> : vector<8x128xf32>
    %131 = tpu.matmul %130, %0, %cst_34 {dimension_numbers = #tpu.dot_dimension_numbers<[1], [0], [0], [1], [0, 0, 1, 1], [], []>} : vector<8x4xf32>, vector<4x128xf32>, vector<8x128xf32> -> vector<8x128xf32>
    %cst_35 = arith.constant dense<0.000000e+00> : vector<8x128xf32>
    %132 = tpu.matmul %109, %1, %cst_35 {dimension_numbers = #tpu.dot_dimension_numbers<[1], [0], [0], [1], [0, 0, 1, 1], [], []>} : vector<8x32xf32>, vector<32x128xf32>, vector<8x128xf32> -> vector<8x128xf32>
    %133 = arith.addf %131, %132 : vector<8x128xf32>
    %134 = vector.broadcast %2 : vector<1x128xf32> to vector<8x128xf32>
    %135 = arith.addf %133, %134 : vector<8x128xf32>
    %136 = arith.negf %135 : vector<8x128xf32>
    %137 = math.exp %136 : vector<8x128xf32>
    %cst_36 = arith.constant 1.000000e+00 : f32
    %138 = vector.broadcast %cst_36 : f32 to vector<8x128xf32>
    %139 = arith.addf %138, %137 : vector<8x128xf32>
    %140 = arith.divf %138, %139 : vector<8x128xf32>
    %141 = math.tanh %135 : vector<8x128xf32>
    %142 = vector.extract_strided_slice %140 {offsets = [0, 0], sizes = [8, 32], strides = [1, 1]} : vector<8x128xf32> to vector<8x32xf32>
    %143 = vector.extract_strided_slice %140 {offsets = [0, 32], sizes = [8, 32], strides = [1, 1]} : vector<8x128xf32> to vector<8x32xf32>
    %144 = vector.extract_strided_slice %140 {offsets = [0, 96], sizes = [8, 32], strides = [1, 1]} : vector<8x128xf32> to vector<8x32xf32>
    %145 = vector.extract_strided_slice %141 {offsets = [0, 64], sizes = [8, 32], strides = [1, 1]} : vector<8x128xf32> to vector<8x32xf32>
    %146 = arith.mulf %143, %107 : vector<8x32xf32>
    %147 = arith.mulf %142, %145 : vector<8x32xf32>
    %148 = arith.addf %146, %147 : vector<8x32xf32>
    %149 = math.tanh %148 : vector<8x32xf32>
    %150 = arith.mulf %144, %149 : vector<8x32xf32>
    %cst_37 = arith.constant dense<0.000000e+00> : vector<8x128xf32>
    %151 = tpu.matmul %150, %3, %cst_37 {dimension_numbers = #tpu.dot_dimension_numbers<[1], [0], [0], [1], [0, 0, 1, 1], [], []>} : vector<8x32xf32>, vector<32x128xf32>, vector<8x128xf32> -> vector<8x128xf32>
    %cst_38 = arith.constant dense<0.000000e+00> : vector<8x128xf32>
    %152 = tpu.matmul %129, %4, %cst_38 {dimension_numbers = #tpu.dot_dimension_numbers<[1], [0], [0], [1], [0, 0, 1, 1], [], []>} : vector<8x32xf32>, vector<32x128xf32>, vector<8x128xf32> -> vector<8x128xf32>
    %153 = arith.addf %151, %152 : vector<8x128xf32>
    %154 = vector.broadcast %5 : vector<1x128xf32> to vector<8x128xf32>
    %155 = arith.addf %153, %154 : vector<8x128xf32>
    %156 = arith.negf %155 : vector<8x128xf32>
    %157 = math.exp %156 : vector<8x128xf32>
    %cst_39 = arith.constant 1.000000e+00 : f32
    %158 = vector.broadcast %cst_39 : f32 to vector<8x128xf32>
    %159 = arith.addf %158, %157 : vector<8x128xf32>
    %160 = arith.divf %158, %159 : vector<8x128xf32>
    %161 = math.tanh %155 : vector<8x128xf32>
    %162 = vector.extract_strided_slice %160 {offsets = [0, 0], sizes = [8, 32], strides = [1, 1]} : vector<8x128xf32> to vector<8x32xf32>
    %163 = vector.extract_strided_slice %160 {offsets = [0, 32], sizes = [8, 32], strides = [1, 1]} : vector<8x128xf32> to vector<8x32xf32>
    %164 = vector.extract_strided_slice %160 {offsets = [0, 96], sizes = [8, 32], strides = [1, 1]} : vector<8x128xf32> to vector<8x32xf32>
    %165 = vector.extract_strided_slice %161 {offsets = [0, 64], sizes = [8, 32], strides = [1, 1]} : vector<8x128xf32> to vector<8x32xf32>
    %166 = arith.mulf %163, %127 : vector<8x32xf32>
    %167 = arith.mulf %162, %165 : vector<8x32xf32>
    %168 = arith.addf %166, %167 : vector<8x32xf32>
    %169 = math.tanh %168 : vector<8x32xf32>
    %170 = arith.mulf %164, %169 : vector<8x32xf32>
    %c0_40 = arith.constant 0 : index
    %c16 = arith.constant 16 : index
    %171 = vector.load %arg0[%c0_40, %c16] : memref<8x32xf32, #tpu.memory_space<vmem>>, vector<8x4xf32>
    %cst_41 = arith.constant dense<0.000000e+00> : vector<8x128xf32>
    %172 = tpu.matmul %171, %0, %cst_41 {dimension_numbers = #tpu.dot_dimension_numbers<[1], [0], [0], [1], [0, 0, 1, 1], [], []>} : vector<8x4xf32>, vector<4x128xf32>, vector<8x128xf32> -> vector<8x128xf32>
    %cst_42 = arith.constant dense<0.000000e+00> : vector<8x128xf32>
    %173 = tpu.matmul %150, %1, %cst_42 {dimension_numbers = #tpu.dot_dimension_numbers<[1], [0], [0], [1], [0, 0, 1, 1], [], []>} : vector<8x32xf32>, vector<32x128xf32>, vector<8x128xf32> -> vector<8x128xf32>
    %174 = arith.addf %172, %173 : vector<8x128xf32>
    %175 = vector.broadcast %2 : vector<1x128xf32> to vector<8x128xf32>
    %176 = arith.addf %174, %175 : vector<8x128xf32>
    %177 = arith.negf %176 : vector<8x128xf32>
    %178 = math.exp %177 : vector<8x128xf32>
    %cst_43 = arith.constant 1.000000e+00 : f32
    %179 = vector.broadcast %cst_43 : f32 to vector<8x128xf32>
    %180 = arith.addf %179, %178 : vector<8x128xf32>
    %181 = arith.divf %179, %180 : vector<8x128xf32>
    %182 = math.tanh %176 : vector<8x128xf32>
    %183 = vector.extract_strided_slice %181 {offsets = [0, 0], sizes = [8, 32], strides = [1, 1]} : vector<8x128xf32> to vector<8x32xf32>
    %184 = vector.extract_strided_slice %181 {offsets = [0, 32], sizes = [8, 32], strides = [1, 1]} : vector<8x128xf32> to vector<8x32xf32>
    %185 = vector.extract_strided_slice %181 {offsets = [0, 96], sizes = [8, 32], strides = [1, 1]} : vector<8x128xf32> to vector<8x32xf32>
    %186 = vector.extract_strided_slice %182 {offsets = [0, 64], sizes = [8, 32], strides = [1, 1]} : vector<8x128xf32> to vector<8x32xf32>
    %187 = arith.mulf %184, %148 : vector<8x32xf32>
    %188 = arith.mulf %183, %186 : vector<8x32xf32>
    %189 = arith.addf %187, %188 : vector<8x32xf32>
    %190 = math.tanh %189 : vector<8x32xf32>
    %191 = arith.mulf %185, %190 : vector<8x32xf32>
    %cst_44 = arith.constant dense<0.000000e+00> : vector<8x128xf32>
    %192 = tpu.matmul %191, %3, %cst_44 {dimension_numbers = #tpu.dot_dimension_numbers<[1], [0], [0], [1], [0, 0, 1, 1], [], []>} : vector<8x32xf32>, vector<32x128xf32>, vector<8x128xf32> -> vector<8x128xf32>
    %cst_45 = arith.constant dense<0.000000e+00> : vector<8x128xf32>
    %193 = tpu.matmul %170, %4, %cst_45 {dimension_numbers = #tpu.dot_dimension_numbers<[1], [0], [0], [1], [0, 0, 1, 1], [], []>} : vector<8x32xf32>, vector<32x128xf32>, vector<8x128xf32> -> vector<8x128xf32>
    %194 = arith.addf %192, %193 : vector<8x128xf32>
    %195 = vector.broadcast %5 : vector<1x128xf32> to vector<8x128xf32>
    %196 = arith.addf %194, %195 : vector<8x128xf32>
    %197 = arith.negf %196 : vector<8x128xf32>
    %198 = math.exp %197 : vector<8x128xf32>
    %cst_46 = arith.constant 1.000000e+00 : f32
    %199 = vector.broadcast %cst_46 : f32 to vector<8x128xf32>
    %200 = arith.addf %199, %198 : vector<8x128xf32>
    %201 = arith.divf %199, %200 : vector<8x128xf32>
    %202 = math.tanh %196 : vector<8x128xf32>
    %203 = vector.extract_strided_slice %201 {offsets = [0, 0], sizes = [8, 32], strides = [1, 1]} : vector<8x128xf32> to vector<8x32xf32>
    %204 = vector.extract_strided_slice %201 {offsets = [0, 32], sizes = [8, 32], strides = [1, 1]} : vector<8x128xf32> to vector<8x32xf32>
    %205 = vector.extract_strided_slice %201 {offsets = [0, 96], sizes = [8, 32], strides = [1, 1]} : vector<8x128xf32> to vector<8x32xf32>
    %206 = vector.extract_strided_slice %202 {offsets = [0, 64], sizes = [8, 32], strides = [1, 1]} : vector<8x128xf32> to vector<8x32xf32>
    %207 = arith.mulf %204, %168 : vector<8x32xf32>
    %208 = arith.mulf %203, %206 : vector<8x32xf32>
    %209 = arith.addf %207, %208 : vector<8x32xf32>
    %210 = math.tanh %209 : vector<8x32xf32>
    %211 = arith.mulf %205, %210 : vector<8x32xf32>
    %c0_47 = arith.constant 0 : index
    %c20 = arith.constant 20 : index
    %212 = vector.load %arg0[%c0_47, %c20] : memref<8x32xf32, #tpu.memory_space<vmem>>, vector<8x4xf32>
    %cst_48 = arith.constant dense<0.000000e+00> : vector<8x128xf32>
    %213 = tpu.matmul %212, %0, %cst_48 {dimension_numbers = #tpu.dot_dimension_numbers<[1], [0], [0], [1], [0, 0, 1, 1], [], []>} : vector<8x4xf32>, vector<4x128xf32>, vector<8x128xf32> -> vector<8x128xf32>
    %cst_49 = arith.constant dense<0.000000e+00> : vector<8x128xf32>
    %214 = tpu.matmul %191, %1, %cst_49 {dimension_numbers = #tpu.dot_dimension_numbers<[1], [0], [0], [1], [0, 0, 1, 1], [], []>} : vector<8x32xf32>, vector<32x128xf32>, vector<8x128xf32> -> vector<8x128xf32>
    %215 = arith.addf %213, %214 : vector<8x128xf32>
    %216 = vector.broadcast %2 : vector<1x128xf32> to vector<8x128xf32>
    %217 = arith.addf %215, %216 : vector<8x128xf32>
    %218 = arith.negf %217 : vector<8x128xf32>
    %219 = math.exp %218 : vector<8x128xf32>
    %cst_50 = arith.constant 1.000000e+00 : f32
    %220 = vector.broadcast %cst_50 : f32 to vector<8x128xf32>
    %221 = arith.addf %220, %219 : vector<8x128xf32>
    %222 = arith.divf %220, %221 : vector<8x128xf32>
    %223 = math.tanh %217 : vector<8x128xf32>
    %224 = vector.extract_strided_slice %222 {offsets = [0, 0], sizes = [8, 32], strides = [1, 1]} : vector<8x128xf32> to vector<8x32xf32>
    %225 = vector.extract_strided_slice %222 {offsets = [0, 32], sizes = [8, 32], strides = [1, 1]} : vector<8x128xf32> to vector<8x32xf32>
    %226 = vector.extract_strided_slice %222 {offsets = [0, 96], sizes = [8, 32], strides = [1, 1]} : vector<8x128xf32> to vector<8x32xf32>
    %227 = vector.extract_strided_slice %223 {offsets = [0, 64], sizes = [8, 32], strides = [1, 1]} : vector<8x128xf32> to vector<8x32xf32>
    %228 = arith.mulf %225, %189 : vector<8x32xf32>
    %229 = arith.mulf %224, %227 : vector<8x32xf32>
    %230 = arith.addf %228, %229 : vector<8x32xf32>
    %231 = math.tanh %230 : vector<8x32xf32>
    %232 = arith.mulf %226, %231 : vector<8x32xf32>
    %cst_51 = arith.constant dense<0.000000e+00> : vector<8x128xf32>
    %233 = tpu.matmul %232, %3, %cst_51 {dimension_numbers = #tpu.dot_dimension_numbers<[1], [0], [0], [1], [0, 0, 1, 1], [], []>} : vector<8x32xf32>, vector<32x128xf32>, vector<8x128xf32> -> vector<8x128xf32>
    %cst_52 = arith.constant dense<0.000000e+00> : vector<8x128xf32>
    %234 = tpu.matmul %211, %4, %cst_52 {dimension_numbers = #tpu.dot_dimension_numbers<[1], [0], [0], [1], [0, 0, 1, 1], [], []>} : vector<8x32xf32>, vector<32x128xf32>, vector<8x128xf32> -> vector<8x128xf32>
    %235 = arith.addf %233, %234 : vector<8x128xf32>
    %236 = vector.broadcast %5 : vector<1x128xf32> to vector<8x128xf32>
    %237 = arith.addf %235, %236 : vector<8x128xf32>
    %238 = arith.negf %237 : vector<8x128xf32>
    %239 = math.exp %238 : vector<8x128xf32>
    %cst_53 = arith.constant 1.000000e+00 : f32
    %240 = vector.broadcast %cst_53 : f32 to vector<8x128xf32>
    %241 = arith.addf %240, %239 : vector<8x128xf32>
    %242 = arith.divf %240, %241 : vector<8x128xf32>
    %243 = math.tanh %237 : vector<8x128xf32>
    %244 = vector.extract_strided_slice %242 {offsets = [0, 0], sizes = [8, 32], strides = [1, 1]} : vector<8x128xf32> to vector<8x32xf32>
    %245 = vector.extract_strided_slice %242 {offsets = [0, 32], sizes = [8, 32], strides = [1, 1]} : vector<8x128xf32> to vector<8x32xf32>
    %246 = vector.extract_strided_slice %242 {offsets = [0, 96], sizes = [8, 32], strides = [1, 1]} : vector<8x128xf32> to vector<8x32xf32>
    %247 = vector.extract_strided_slice %243 {offsets = [0, 64], sizes = [8, 32], strides = [1, 1]} : vector<8x128xf32> to vector<8x32xf32>
    %248 = arith.mulf %245, %209 : vector<8x32xf32>
    %249 = arith.mulf %244, %247 : vector<8x32xf32>
    %250 = arith.addf %248, %249 : vector<8x32xf32>
    %251 = math.tanh %250 : vector<8x32xf32>
    %252 = arith.mulf %246, %251 : vector<8x32xf32>
    %c0_54 = arith.constant 0 : index
    %c24 = arith.constant 24 : index
    %253 = vector.load %arg0[%c0_54, %c24] : memref<8x32xf32, #tpu.memory_space<vmem>>, vector<8x4xf32>
    %cst_55 = arith.constant dense<0.000000e+00> : vector<8x128xf32>
    %254 = tpu.matmul %253, %0, %cst_55 {dimension_numbers = #tpu.dot_dimension_numbers<[1], [0], [0], [1], [0, 0, 1, 1], [], []>} : vector<8x4xf32>, vector<4x128xf32>, vector<8x128xf32> -> vector<8x128xf32>
    %cst_56 = arith.constant dense<0.000000e+00> : vector<8x128xf32>
    %255 = tpu.matmul %232, %1, %cst_56 {dimension_numbers = #tpu.dot_dimension_numbers<[1], [0], [0], [1], [0, 0, 1, 1], [], []>} : vector<8x32xf32>, vector<32x128xf32>, vector<8x128xf32> -> vector<8x128xf32>
    %256 = arith.addf %254, %255 : vector<8x128xf32>
    %257 = vector.broadcast %2 : vector<1x128xf32> to vector<8x128xf32>
    %258 = arith.addf %256, %257 : vector<8x128xf32>
    %259 = arith.negf %258 : vector<8x128xf32>
    %260 = math.exp %259 : vector<8x128xf32>
    %cst_57 = arith.constant 1.000000e+00 : f32
    %261 = vector.broadcast %cst_57 : f32 to vector<8x128xf32>
    %262 = arith.addf %261, %260 : vector<8x128xf32>
    %263 = arith.divf %261, %262 : vector<8x128xf32>
    %264 = math.tanh %258 : vector<8x128xf32>
    %265 = vector.extract_strided_slice %263 {offsets = [0, 0], sizes = [8, 32], strides = [1, 1]} : vector<8x128xf32> to vector<8x32xf32>
    %266 = vector.extract_strided_slice %263 {offsets = [0, 32], sizes = [8, 32], strides = [1, 1]} : vector<8x128xf32> to vector<8x32xf32>
    %267 = vector.extract_strided_slice %263 {offsets = [0, 96], sizes = [8, 32], strides = [1, 1]} : vector<8x128xf32> to vector<8x32xf32>
    %268 = vector.extract_strided_slice %264 {offsets = [0, 64], sizes = [8, 32], strides = [1, 1]} : vector<8x128xf32> to vector<8x32xf32>
    %269 = arith.mulf %266, %230 : vector<8x32xf32>
    %270 = arith.mulf %265, %268 : vector<8x32xf32>
    %271 = arith.addf %269, %270 : vector<8x32xf32>
    %272 = math.tanh %271 : vector<8x32xf32>
    %273 = arith.mulf %267, %272 : vector<8x32xf32>
    %cst_58 = arith.constant dense<0.000000e+00> : vector<8x128xf32>
    %274 = tpu.matmul %273, %3, %cst_58 {dimension_numbers = #tpu.dot_dimension_numbers<[1], [0], [0], [1], [0, 0, 1, 1], [], []>} : vector<8x32xf32>, vector<32x128xf32>, vector<8x128xf32> -> vector<8x128xf32>
    %cst_59 = arith.constant dense<0.000000e+00> : vector<8x128xf32>
    %275 = tpu.matmul %252, %4, %cst_59 {dimension_numbers = #tpu.dot_dimension_numbers<[1], [0], [0], [1], [0, 0, 1, 1], [], []>} : vector<8x32xf32>, vector<32x128xf32>, vector<8x128xf32> -> vector<8x128xf32>
    %276 = arith.addf %274, %275 : vector<8x128xf32>
    %277 = vector.broadcast %5 : vector<1x128xf32> to vector<8x128xf32>
    %278 = arith.addf %276, %277 : vector<8x128xf32>
    %279 = arith.negf %278 : vector<8x128xf32>
    %280 = math.exp %279 : vector<8x128xf32>
    %cst_60 = arith.constant 1.000000e+00 : f32
    %281 = vector.broadcast %cst_60 : f32 to vector<8x128xf32>
    %282 = arith.addf %281, %280 : vector<8x128xf32>
    %283 = arith.divf %281, %282 : vector<8x128xf32>
    %284 = math.tanh %278 : vector<8x128xf32>
    %285 = vector.extract_strided_slice %283 {offsets = [0, 0], sizes = [8, 32], strides = [1, 1]} : vector<8x128xf32> to vector<8x32xf32>
    %286 = vector.extract_strided_slice %283 {offsets = [0, 32], sizes = [8, 32], strides = [1, 1]} : vector<8x128xf32> to vector<8x32xf32>
    %287 = vector.extract_strided_slice %283 {offsets = [0, 96], sizes = [8, 32], strides = [1, 1]} : vector<8x128xf32> to vector<8x32xf32>
    %288 = vector.extract_strided_slice %284 {offsets = [0, 64], sizes = [8, 32], strides = [1, 1]} : vector<8x128xf32> to vector<8x32xf32>
    %289 = arith.mulf %286, %250 : vector<8x32xf32>
    %290 = arith.mulf %285, %288 : vector<8x32xf32>
    %291 = arith.addf %289, %290 : vector<8x32xf32>
    %292 = math.tanh %291 : vector<8x32xf32>
    %293 = arith.mulf %287, %292 : vector<8x32xf32>
    %c0_61 = arith.constant 0 : index
    %c28 = arith.constant 28 : index
    %294 = vector.load %arg0[%c0_61, %c28] : memref<8x32xf32, #tpu.memory_space<vmem>>, vector<8x4xf32>
    %cst_62 = arith.constant dense<0.000000e+00> : vector<8x128xf32>
    %295 = tpu.matmul %294, %0, %cst_62 {dimension_numbers = #tpu.dot_dimension_numbers<[1], [0], [0], [1], [0, 0, 1, 1], [], []>} : vector<8x4xf32>, vector<4x128xf32>, vector<8x128xf32> -> vector<8x128xf32>
    %cst_63 = arith.constant dense<0.000000e+00> : vector<8x128xf32>
    %296 = tpu.matmul %273, %1, %cst_63 {dimension_numbers = #tpu.dot_dimension_numbers<[1], [0], [0], [1], [0, 0, 1, 1], [], []>} : vector<8x32xf32>, vector<32x128xf32>, vector<8x128xf32> -> vector<8x128xf32>
    %297 = arith.addf %295, %296 : vector<8x128xf32>
    %298 = vector.broadcast %2 : vector<1x128xf32> to vector<8x128xf32>
    %299 = arith.addf %297, %298 : vector<8x128xf32>
    %300 = arith.negf %299 : vector<8x128xf32>
    %301 = math.exp %300 : vector<8x128xf32>
    %cst_64 = arith.constant 1.000000e+00 : f32
    %302 = vector.broadcast %cst_64 : f32 to vector<8x128xf32>
    %303 = arith.addf %302, %301 : vector<8x128xf32>
    %304 = arith.divf %302, %303 : vector<8x128xf32>
    %305 = math.tanh %299 : vector<8x128xf32>
    %306 = vector.extract_strided_slice %304 {offsets = [0, 0], sizes = [8, 32], strides = [1, 1]} : vector<8x128xf32> to vector<8x32xf32>
    %307 = vector.extract_strided_slice %304 {offsets = [0, 32], sizes = [8, 32], strides = [1, 1]} : vector<8x128xf32> to vector<8x32xf32>
    %308 = vector.extract_strided_slice %304 {offsets = [0, 96], sizes = [8, 32], strides = [1, 1]} : vector<8x128xf32> to vector<8x32xf32>
    %309 = vector.extract_strided_slice %305 {offsets = [0, 64], sizes = [8, 32], strides = [1, 1]} : vector<8x128xf32> to vector<8x32xf32>
    %310 = arith.mulf %307, %271 : vector<8x32xf32>
    %311 = arith.mulf %306, %309 : vector<8x32xf32>
    %312 = arith.addf %310, %311 : vector<8x32xf32>
    %313 = math.tanh %312 : vector<8x32xf32>
    %314 = arith.mulf %308, %313 : vector<8x32xf32>
    %cst_65 = arith.constant dense<0.000000e+00> : vector<8x128xf32>
    %315 = tpu.matmul %314, %3, %cst_65 {dimension_numbers = #tpu.dot_dimension_numbers<[1], [0], [0], [1], [0, 0, 1, 1], [], []>} : vector<8x32xf32>, vector<32x128xf32>, vector<8x128xf32> -> vector<8x128xf32>
    %cst_66 = arith.constant dense<0.000000e+00> : vector<8x128xf32>
    %316 = tpu.matmul %293, %4, %cst_66 {dimension_numbers = #tpu.dot_dimension_numbers<[1], [0], [0], [1], [0, 0, 1, 1], [], []>} : vector<8x32xf32>, vector<32x128xf32>, vector<8x128xf32> -> vector<8x128xf32>
    %317 = arith.addf %315, %316 : vector<8x128xf32>
    %318 = vector.broadcast %5 : vector<1x128xf32> to vector<8x128xf32>
    %319 = arith.addf %317, %318 : vector<8x128xf32>
    %320 = arith.negf %319 : vector<8x128xf32>
    %321 = math.exp %320 : vector<8x128xf32>
    %cst_67 = arith.constant 1.000000e+00 : f32
    %322 = vector.broadcast %cst_67 : f32 to vector<8x128xf32>
    %323 = arith.addf %322, %321 : vector<8x128xf32>
    %324 = arith.divf %322, %323 : vector<8x128xf32>
    %325 = math.tanh %319 : vector<8x128xf32>
    %326 = vector.extract_strided_slice %324 {offsets = [0, 0], sizes = [8, 32], strides = [1, 1]} : vector<8x128xf32> to vector<8x32xf32>
    %327 = vector.extract_strided_slice %324 {offsets = [0, 32], sizes = [8, 32], strides = [1, 1]} : vector<8x128xf32> to vector<8x32xf32>
    %328 = vector.extract_strided_slice %324 {offsets = [0, 96], sizes = [8, 32], strides = [1, 1]} : vector<8x128xf32> to vector<8x32xf32>
    %329 = vector.extract_strided_slice %325 {offsets = [0, 64], sizes = [8, 32], strides = [1, 1]} : vector<8x128xf32> to vector<8x32xf32>
    %330 = arith.mulf %327, %291 : vector<8x32xf32>
    %331 = arith.mulf %326, %329 : vector<8x32xf32>
    %332 = arith.addf %330, %331 : vector<8x32xf32>
    %333 = math.tanh %332 : vector<8x32xf32>
    %334 = arith.mulf %328, %333 : vector<8x32xf32>
    %335 = tpu.concatenate %47, %88, %129, %170, %211, %252, %293, %334 in 0 : vector<8x32xf32>, vector<8x32xf32>, vector<8x32xf32>, vector<8x32xf32>, vector<8x32xf32>, vector<8x32xf32>, vector<8x32xf32>, vector<8x32xf32> -> vector<64x32xf32>
    %c0_68 = arith.constant 0 : index
    %c0_69 = arith.constant 0 : index
    %336 = vector.load %arg7[%c0_68, %c0_69] : memref<32x32xf32, #tpu.memory_space<vmem>>, vector<32x32xf32>
    %cst_70 = arith.constant dense<0.000000e+00> : vector<64x32xf32>
    %337 = tpu.matmul %335, %336, %cst_70 {dimension_numbers = #tpu.dot_dimension_numbers<[1], [0], [0], [1], [0, 0, 1, 1], [], []>} : vector<64x32xf32>, vector<32x32xf32>, vector<64x32xf32> -> vector<64x32xf32>
    %c0_71 = arith.constant 0 : index
    %c0_72 = arith.constant 0 : index
    %338 = vector.load %arg8[%c0_71, %c0_72] : memref<1x32xf32, #tpu.memory_space<vmem>>, vector<1x32xf32>
    %339 = vector.broadcast %338 : vector<1x32xf32> to vector<64x32xf32>
    %340 = arith.addf %337, %339 : vector<64x32xf32>
    %341 = math.tanh %340 : vector<64x32xf32>
    %c0_73 = arith.constant 0 : index
    %c0_74 = arith.constant 0 : index
    %342 = vector.load %arg9[%c0_73, %c0_74] : memref<32x1xf32, #tpu.memory_space<vmem>>, vector<32x1xf32>
    %cst_75 = arith.constant dense<0.000000e+00> : vector<64x1xf32>
    %343 = tpu.matmul %341, %342, %cst_75 {dimension_numbers = #tpu.dot_dimension_numbers<[1], [0], [0], [1], [0, 0, 1, 1], [], []>} : vector<64x32xf32>, vector<32x1xf32>, vector<64x1xf32> -> vector<64x1xf32>
    %c0_76 = arith.constant 0 : index
    %c0_77 = arith.constant 0 : index
    %344 = vector.load %arg10[%c0_76, %c0_77] : memref<1x1xf32, #tpu.memory_space<vmem>>, vector<1x1xf32>
    %345 = vector.broadcast %344 : vector<1x1xf32> to vector<64x1xf32>
    %346 = arith.addf %343, %345 : vector<64x1xf32>
    %347 = vector.shape_cast %346 : vector<64x1xf32> to vector<1x64x1xf32>
    %cst_78 = arith.constant dense<0xFF800000> : vector<1xf32>
    %348 = vector.multi_reduction <maximumf>, %347, %cst_78 [1, 2] : vector<1x64x1xf32> to vector<1xf32>
    %349 = vector.shape_cast %348 : vector<1xf32> to vector<1x1x1xf32>
    %350 = vector.extract %349[0, 0, 0] : f32 from vector<1x1x1xf32>
    %351 = vector.broadcast %350 : f32 to vector<1x1xf32>
    %352 = vector.broadcast %351 : vector<1x1xf32> to vector<64x1xf32>
    %353 = arith.subf %346, %352 : vector<64x1xf32>
    %354 = math.exp %353 : vector<64x1xf32>
    %cst_79 = arith.constant 0.000000e+00 : f32
    %355 = vector.broadcast %cst_79 : f32 to vector<8x1xf32>
    %356 = vector.extract_strided_slice %354 {offsets = [0, 0], sizes = [8, 1], strides = [1, 1]} : vector<64x1xf32> to vector<8x1xf32>
    %357 = arith.addf %355, %356 : vector<8x1xf32>
    %358 = tpu.reciprocal %357 {approx = true} : vector<8x1xf32> -> vector<8x1xf32>
    %359 = vector.extract_strided_slice %354 {offsets = [8, 0], sizes = [8, 1], strides = [1, 1]} : vector<64x1xf32> to vector<8x1xf32>
    %360 = arith.addf %357, %359 : vector<8x1xf32>
    %361 = tpu.reciprocal %360 {approx = true} : vector<8x1xf32> -> vector<8x1xf32>
    %362 = vector.extract_strided_slice %354 {offsets = [16, 0], sizes = [8, 1], strides = [1, 1]} : vector<64x1xf32> to vector<8x1xf32>
    %363 = arith.addf %360, %362 : vector<8x1xf32>
    %364 = tpu.reciprocal %363 {approx = true} : vector<8x1xf32> -> vector<8x1xf32>
    %365 = vector.extract_strided_slice %354 {offsets = [24, 0], sizes = [8, 1], strides = [1, 1]} : vector<64x1xf32> to vector<8x1xf32>
    %366 = arith.addf %363, %365 : vector<8x1xf32>
    %367 = tpu.reciprocal %366 {approx = true} : vector<8x1xf32> -> vector<8x1xf32>
    %368 = vector.extract_strided_slice %354 {offsets = [32, 0], sizes = [8, 1], strides = [1, 1]} : vector<64x1xf32> to vector<8x1xf32>
    %369 = arith.addf %366, %368 : vector<8x1xf32>
    %370 = tpu.reciprocal %369 {approx = true} : vector<8x1xf32> -> vector<8x1xf32>
    %371 = vector.extract_strided_slice %354 {offsets = [40, 0], sizes = [8, 1], strides = [1, 1]} : vector<64x1xf32> to vector<8x1xf32>
    %372 = arith.addf %369, %371 : vector<8x1xf32>
    %373 = tpu.reciprocal %372 {approx = true} : vector<8x1xf32> -> vector<8x1xf32>
    %374 = vector.extract_strided_slice %354 {offsets = [48, 0], sizes = [8, 1], strides = [1, 1]} : vector<64x1xf32> to vector<8x1xf32>
    %375 = arith.addf %372, %374 : vector<8x1xf32>
    %376 = tpu.reciprocal %375 {approx = true} : vector<8x1xf32> -> vector<8x1xf32>
    %377 = vector.extract_strided_slice %354 {offsets = [56, 0], sizes = [8, 1], strides = [1, 1]} : vector<64x1xf32> to vector<8x1xf32>
    %378 = arith.addf %375, %377 : vector<8x1xf32>
    %379 = tpu.reciprocal %378 {approx = true} : vector<8x1xf32> -> vector<8x1xf32>
    %cst_80 = arith.constant 0.000000e+00 : f32
    %380 = vector.broadcast %cst_80 : f32 to vector<8x32xf32>
    %cst_81 = arith.constant 0.000000e+00 : f32
    %381 = vector.broadcast %cst_81 : f32 to vector<8x1xf32>
    %382 = arith.addf %381, %379 : vector<8x1xf32>
    %383 = vector.extract_strided_slice %354 {offsets = [56, 0], sizes = [8, 1], strides = [1, 1]} : vector<64x1xf32> to vector<8x1xf32>
    %384 = arith.mulf %383, %382 : vector<8x1xf32>
    %385 = vector.broadcast %384 : vector<8x1xf32> to vector<8x32xf32>
    %386 = arith.mulf %385, %334 : vector<8x32xf32>
    %387 = arith.addf %380, %386 : vector<8x32xf32>
    %388 = arith.addf %382, %376 : vector<8x1xf32>
    %389 = vector.extract_strided_slice %354 {offsets = [48, 0], sizes = [8, 1], strides = [1, 1]} : vector<64x1xf32> to vector<8x1xf32>
    %390 = arith.mulf %389, %388 : vector<8x1xf32>
    %391 = vector.broadcast %390 : vector<8x1xf32> to vector<8x32xf32>
    %392 = arith.mulf %391, %293 : vector<8x32xf32>
    %393 = arith.addf %387, %392 : vector<8x32xf32>
    %394 = arith.addf %388, %373 : vector<8x1xf32>
    %395 = vector.extract_strided_slice %354 {offsets = [40, 0], sizes = [8, 1], strides = [1, 1]} : vector<64x1xf32> to vector<8x1xf32>
    %396 = arith.mulf %395, %394 : vector<8x1xf32>
    %397 = vector.broadcast %396 : vector<8x1xf32> to vector<8x32xf32>
    %398 = arith.mulf %397, %252 : vector<8x32xf32>
    %399 = arith.addf %393, %398 : vector<8x32xf32>
    %400 = arith.addf %394, %370 : vector<8x1xf32>
    %401 = vector.extract_strided_slice %354 {offsets = [32, 0], sizes = [8, 1], strides = [1, 1]} : vector<64x1xf32> to vector<8x1xf32>
    %402 = arith.mulf %401, %400 : vector<8x1xf32>
    %403 = vector.broadcast %402 : vector<8x1xf32> to vector<8x32xf32>
    %404 = arith.mulf %403, %211 : vector<8x32xf32>
    %405 = arith.addf %399, %404 : vector<8x32xf32>
    %406 = arith.addf %400, %367 : vector<8x1xf32>
    %407 = vector.extract_strided_slice %354 {offsets = [24, 0], sizes = [8, 1], strides = [1, 1]} : vector<64x1xf32> to vector<8x1xf32>
    %408 = arith.mulf %407, %406 : vector<8x1xf32>
    %409 = vector.broadcast %408 : vector<8x1xf32> to vector<8x32xf32>
    %410 = arith.mulf %409, %170 : vector<8x32xf32>
    %411 = arith.addf %405, %410 : vector<8x32xf32>
    %412 = arith.addf %406, %364 : vector<8x1xf32>
    %413 = vector.extract_strided_slice %354 {offsets = [16, 0], sizes = [8, 1], strides = [1, 1]} : vector<64x1xf32> to vector<8x1xf32>
    %414 = arith.mulf %413, %412 : vector<8x1xf32>
    %415 = vector.broadcast %414 : vector<8x1xf32> to vector<8x32xf32>
    %416 = arith.mulf %415, %129 : vector<8x32xf32>
    %417 = arith.addf %411, %416 : vector<8x32xf32>
    %418 = arith.addf %412, %361 : vector<8x1xf32>
    %419 = vector.extract_strided_slice %354 {offsets = [8, 0], sizes = [8, 1], strides = [1, 1]} : vector<64x1xf32> to vector<8x1xf32>
    %420 = arith.mulf %419, %418 : vector<8x1xf32>
    %421 = vector.broadcast %420 : vector<8x1xf32> to vector<8x32xf32>
    %422 = arith.mulf %421, %88 : vector<8x32xf32>
    %423 = arith.addf %417, %422 : vector<8x32xf32>
    %424 = arith.addf %418, %358 : vector<8x1xf32>
    %425 = vector.extract_strided_slice %354 {offsets = [0, 0], sizes = [8, 1], strides = [1, 1]} : vector<64x1xf32> to vector<8x1xf32>
    %426 = arith.mulf %425, %424 : vector<8x1xf32>
    %427 = vector.broadcast %426 : vector<8x1xf32> to vector<8x32xf32>
    %428 = arith.mulf %427, %47 : vector<8x32xf32>
    %429 = arith.addf %423, %428 : vector<8x32xf32>
    %c0_82 = arith.constant 0 : index
    %c0_83 = arith.constant 0 : index
    %430 = vector.load %arg11[%c0_82, %c0_83] : memref<8x32xf32, #tpu.memory_space<vmem>>, vector<8x32xf32>
    tpu.vector_store %arg11[%c0_82, %c0_83], %429 {strides = array<i32>} : memref<8x32xf32, #tpu.memory_space<vmem>>, vector<8x32xf32>,
    return
  }
}

</mosaic_0001>

<bundles_post_ra>
// kernel: tpu_custom_call.1
= control target key start
LH: loop header
LB: loop body
LE: loop exit
PB: predicated region body
PF: predicated region fallthrough
CT: control target
= control target key end

     0   :  { %s4992_s0 = inlined_call_operand.vmem [shape: f32[8,32], index: 0, kind: input, shape index: {}]   ;;  %s4993_s1 = inlined_call_operand.vmem [shape: f32[4,128], index: 1, kind: input, shape index: {}]   ;;  %s4994_s2 = inlined_call_operand.vmem [shape: f32[32,128], index: 2, kind: input, shape index: {}]   ;;  %s4995_s3 = inlined_call_operand.vmem [shape: f32[1,128], index: 3, kind: input, shape index: {}]   ;;  %s4996_s4 = inlined_call_operand.hbm [shape: f32[32,128], index: 4, kind: input, shape index: {}]   ;;  %s4997_s5 = inlined_call_operand.hbm [shape: f32[32,128], index: 5, kind: input, shape index: {}]   ;;  %s4998_s6 = inlined_call_operand.vmem [shape: f32[1,128], index: 6, kind: input, shape index: {}]   ;;  %s4999_s7 = inlined_call_operand.hbm [shape: f32[32,32], index: 7, kind: input, shape index: {}]   ;;  %s5000_s8 = inlined_call_operand.vmem [shape: f32[1,32], index: 8, kind: input, shape index: {}]   ;;  %s5001_s9 = inlined_call_operand.vmem [shape: f32[32,1], index: 9, kind: input, shape index: {}]   ;;  %s5002_s10 = inlined_call_operand.<no memory space> [shape: f32[1,1], index: 10, kind: input, shape index: {}]   ;;  %s5003_s11 = inlined_call_operand.hbm [shape: f32[8,32], index: 11, kind: output, shape index: {}]  }
   0x1   :  { %v16_v0 = vstv %s5002_s10 }
   0x2   :  { %17 = vst [vmem:[#allocation2] sm:$0x1] %v16_v0 }
   0x3   :  { %18 = vsyncpa [#allocation4], 0 }
   0x4   :  { %19 = vsyncpa [#allocation7], 0 }
   0x5   :  { %20 = vsyncpa [#allocation5], 0  ;;  %s4327_s19 = smov [#allocation6]   ;;  %s4328_s21 = smov [#allocation3]  }
   0x6   :  { %s46_s20 = sshll.u32 %s4327_s19, 4  ;;  %s34_s22 = sshll.u32 %s4328_s21, 4  ;;  %s47_s20 = int_to_ptr.vmem [resolvable:$true] %s46_s20  ;;  %s4409_s22 = int_to_ptr.vmem [resolvable:$true] %s34_s22 }
   0x7   :  { %s4233_s25 = scalar_lea.hbm %s4997_s5, 512 }
   0x8   :  { %p4234_p0 = scmp.ne.s32.totalorder %s4997_s5, %s4233_s25  ;;  %p4237_p1 = scmp.lt.u32.totalorder %s4233_s25, %s4997_s5 }
   0xa   :  { %p4239_p2 = pnand %p4237_p1, %p4234_p0 }
   0xc   :  { %4242 = shalt.err (!%p4239_p2)
}
   0xd   :  { %s4243_s29 = scalar_lea.vmem %s47_s20, 512  ;;  %p4248_p4 = scmp.lt.s32.totalorder %s47_s20, %s47_s20 }
   0xe   :  { %p4244_p3 = scmp.ne.s32.totalorder %s47_s20, %s4243_s29  ;;  %p4249_p5 = scmp.lt.s32.totalorder %s4243_s29, %s4243_s29 }
  0x10   :  { %p4250_p6 = por %p4249_p5, %p4248_p4 }
  0x12   :  { %p4251_p7 = pnand %p4250_p6, %p4244_p3 }
  0x14   :  { %4254 = shalt.err (!%p4251_p7)
}
  0x15   :  { %s4329_s30 = smov 128   ;;  %s4330_s12 = smov 8  }
  0x16   :  { %52 = dma.hbm_to_vmem [thread:$0]  %s4997_s5, 512, %s47_s20, [#allocation7], %s4329_s30, %s4329_s30, %s4330_s12  }
  0x17   :  { %s4255_s17 = scalar_lea.hbm %s4996_s4, 512 }
  0x18   :  { %p4256_p8 = scmp.ne.s32.totalorder %s4996_s4, %s4255_s17  ;;  %p4259_p9 = scmp.lt.u32.totalorder %s4255_s17, %s4996_s4 }
  0x1a   :  { %p4261_p10 = pnand %p4259_p9, %p4256_p8 }
  0x1c   :  { %4264 = shalt.err (!%p4261_p10)
}
  0x1d   :  { %s4265_s24 = scalar_lea.vmem %s4409_s22, 512  ;;  %p4270_p12 = scmp.lt.s32.totalorder %s4409_s22, %s4409_s22 }
  0x1e   :  { %p4266_p11 = scmp.ne.s32.totalorder %s4409_s22, %s4265_s24  ;;  %p4271_p13 = scmp.lt.s32.totalorder %s4265_s24, %s4265_s24 }
  0x20   :  { %p4272_p0 = por %p4271_p13, %p4270_p12 }
  0x22   :  { %p4273_p1 = pnand %p4272_p0, %p4266_p11 }
  0x24   :  { %4276 = shalt.err (!%p4273_p1)
}
  0x25   :  { %40 = dma.hbm_to_vmem [thread:$0]  %s4996_s4, 512, %s4409_s22, [#allocation4], %s4329_s30, %s4329_s30, %s4330_s12  }
  0x26   :  { %s4331_s25 = smov [#allocation8]   ;;  %s4277_s28 = scalar_lea.hbm %s4999_s7, 512 }
  0x27   :  { %s60_s26 = sshll.u32 %s4331_s25, 4  ;;  %p4278_p2 = scmp.ne.s32.totalorder %s4999_s7, %s4277_s28  ;;  %s61_s26 = int_to_ptr.vmem [resolvable:$true] %s60_s26 }
  0x28   :  { %p4281_p3 = scmp.lt.u32.totalorder %s4277_s28, %s4999_s7 }
  0x2a   :  { %p4283_p4 = pnand %p4281_p3, %p4278_p2 }
  0x2c   :  { %4286 = shalt.err (!%p4283_p4)
}
  0x2d   :  { %s4287_s16 = scalar_lea.vmem %s61_s26, 512  ;;  %p4292_p6 = scmp.lt.s32.totalorder %s61_s26, %s61_s26 }
  0x2e   :  { %p4288_p5 = scmp.ne.s32.totalorder %s61_s26, %s4287_s16  ;;  %p4293_p7 = scmp.lt.s32.totalorder %s4287_s16, %s4287_s16 }
  0x30   :  { %p4294_p8 = por %p4293_p7, %p4292_p6 }
  0x32   :  { %p4295_p9 = pnand %p4294_p8, %p4288_p5 }
  0x34   :  { %4298 = shalt.err (!%p4295_p9)
}
  0x35   :  { %66 = dma.hbm_to_vmem [thread:$0]  %s4999_s7, 512, %s61_s26, [#allocation7], %s4329_s30, %s4329_s30, %s4330_s12  }
  0x36   :  { %4321 = dma.done.wait [#allocation4], 512  }
  0x37   :  { %4322 = vsyncadd [#allocation4], 4294966784 }
  0x38   :  { %4323 = dma.done.wait [#allocation7], 1024  }
  0x39   :  { %4324 = vsyncadd [#allocation7], 4294966272  ;;  %v4332_v1 = vmov 0.0|0.0   ;;  %v4333_v2 = vmov 0.0   ;;  %vm4334_vm0 = vmmov 0   ;;  %vm176_vm1 = vcmask 1043456  }
  0x3a   :  { %3871 = vmatprep.subr.bf16.mxu0 %v4332_v1  ;;  %3538 = vmatprep.subr.mxu1 %v4333_v2  ;;  %v83_v3 = vld [vmem:[%s4994_s2] sm:$0xff]  ;;  %v84_v4 = vld [vmem:[%s4994_s2 + $0x8] sm:$0xff]  ;;  %v85_v5 = vld [vmem:[%s4994_s2 + $0x10] sm:$0xff]  ;;  %vm172_vm2 = vcmask 31744   ;;  %s4335_s27 = smov 64   ;;  %s4336_s10 = smov 32  }
  0x3b   :  { %3540 = vmatprep.mubr.msk.f32.mxu1 %vm4334_vm0, %v4333_v2  ;;  %3535 = vmatprep.mubr.msk.f32.mxu0 %vm4334_vm0, %v4333_v2  ;;  %v4476_v6 = vpack.c.bf16 %v84_v4, %v83_v3  ;;  %v86_v7 = vld [vmem:[%s4994_s2 + $0x18] sm:$0xff]  ;;  %v4484_v8 = vld [vmem:[%s4993_s1] sm:$0xf]  ;;  %v93_v29 = vld [vmem:[#allocation6 + $0x8] sm:$0xff]  ;;  %s4337_s28 = smov 124   ;;  %vm98_vm3 = vcmask 261120  }
  0x3c   :  { %v4489_v9 = vld [vmem:[%s4992_s0] sm:$0xff]  ;;  %3539 = vmatpush3.msk.msra.mxu1 %vm176_vm1, %v4484_v8  ;;  %v4494_v10 = vpack.c.bf16 %v86_v7, %v85_v5  ;;  %v94_v30 = vld [vmem:[#allocation6 + $0x10] sm:$0xff]  ;;  %v89_v34 = vld [vmem:[#allocation3 + $0x8] sm:$0xff]  ;;  %s4338_s14 = smov 120   ;;  %s4339_s15 = smov 116   ;;  %vm3134_vm4 = vcmask 7168  }
  0x3d   :  { %3873 = vmatpush3.bf16.msra.mxu0 %v4476_v6  ;;  %3541 = vmatmul.mubr.msk.f32.vlgmr.msra.gmra.mrb[0].mxu1 %vm172_vm2, %v4489_v9  ;;  %v4510_v13 = vld [vmem:[%s4995_s3] ss:$0 sm:$0xff]  ;;  %v92_v28 = vld [vmem:[#allocation6] sm:$0xff]  ;;  %v90_v36 = vld [vmem:[#allocation3 + $0x10] sm:$0xff]  ;;  %s4340_s16 = smov 112   ;;  %s4341_s4 = smov 108  }
  0x3e   :  { %3874 = vmatprep.subr.bf16.mxu0 %v4332_v1  ;;  %3877 = vmatprep.subr.bf16.mxu1 %v4332_v1  ;;  %v4519_v31 = vpack.c.bf16 %v93_v29, %v92_v28  ;;  %v95_v32 = vld [vmem:[#allocation6 + $0x18] sm:$0xff]  ;;  %v88_v33 = vld [vmem:[#allocation3] sm:$0xff]  ;;  %s4342_s22 = smov 104   ;;  %s4343_s30 = smov 100  }
  0x3f   :  { %3551 = vmatprep.mubr.msk.f32.mxu1 %vm4334_vm0, %v4333_v2  ;;  %v4521_v35 = vpack.c.bf16 %v89_v34, %v88_v33  ;;  %v91_v37 = vld [vmem:[#allocation3 + $0x18] sm:$0xff]  ;;  %v4524_v38 = vpack.c.bf16 %v95_v32, %v94_v30 }
  0x40   :  { %3879 = vmatpush3.bf16.msra.mxu1 %v4519_v31  ;;  %v4528_v39 = vpack.c.bf16 %v91_v37, %v90_v36  ;;  %v4567_v47 = vld [vmem:[%s4998_s6] ss:$0 sm:$0xff] }
  0x41   :  { %3876 = vmatpush3.bf16.msra.mxu0 %v4494_v10  ;;  %3880 = vmatprep.subr.bf16.mxu1 %v4332_v1 }
  0x42   :  { %3883 = vmatprep.subr.bf16.mxu0 %v4332_v1 }
  0x44   :  { %3536 = vmatmul.mubr.f32.vlgmr.msra.gmra.mrb[0].mxu0 %v4333_v2  ;;  %3882 = vmatpush3.bf16.msra.mxu1 %v4524_v38 }
  0x45   :  { %3562 = vmatprep.mubr.msk.f32.mxu0 %vm4334_vm0, %v4333_v2  ;;  %3885 = vmatpush3.bf16.msra.mxu0 %v4521_v35 }
  0x46   :  { %3886 = vmatprep.subr.bf16.mxu0 %v4332_v1  ;;  %3889 = vmatprep.subr.bf16.mxu1 %v4332_v1 }
  0x47   :  { %3552 = vmatmul.mubr.f32.vlgmr.msra.gmra.mrb[2].mxu1 %v4333_v2 }
  0x48   :  { %3891 = vmatpush3.bf16.msra.mxu1 %v4476_v6  ;;  %3573 = vmatprep.mubr.msk.f32.mxu1 %vm4334_vm0, %v4333_v2 }
  0x49   :  { %3888 = vmatpush3.bf16.msra.mxu0 %v4528_v39  ;;  %3892 = vmatprep.subr.bf16.mxu1 %v4332_v1 }
  0x4a   :  { %3576 = vmatprep.subr.mxu0 %v4333_v2 }
  0x4c   :  { %3894 = vmatpush3.bf16.msra.mxu1 %v4494_v10 }
  0x4d   :  { %3895 = vmatprep.subr.bf16.mxu1 %v4332_v1 }
 0x110   :  { %v246_v11 = vpop.f32.mrb[0].mxu1 }
 0x111   :  { %v3542_v12 = vpop.f32.mrb[1].mxu1 }
 0x117   :  { %v168_v14 = vpop.f32.mrb[0].mxu0 }
 0x118   :  { %v247_v15 = vadd.f32 %v246_v11, %v168_v14  ;;  %v3537_v16 = vpop.f32.mrb[1].mxu0 }
 0x11a   :  { %v256_v17 = vadd.f32 %v4510_v13, %v247_v15  ;;  %v347_v43 = vpop.f32.mrb[2].mxu1 }
 0x11b   :  { %v3553_v44 = vpop.f32.mrb[3].mxu1 }
 0x11c   :  { %4053 = vtanh.f32 %v256_v17  ;;  %v3296_v19 = vmul.f32 -1.442695, %v256_v17 }
 0x11e   :  { %4055 = vpow2.f32 %v3296_v19 }
 0x126   :  { %v4054_v18 = vpop.eup %4053 }
 0x127   :  { %266 = vrot.lane.b32.xlu0 %v4054_v18, %s4335_s27 }
 0x128   :  { %v4056_v20 = vpop.eup %4055 }
 0x129   :  { %v260_v21 = vadd.f32 1.0, %v4056_v20 }
 0x12b   :  { %4057 = vrcp.f32 %v260_v21 }
 0x135   :  { %v4058_v22 = vpop.eup %4057 }
 0x136   :  { %v264_v25 = vmul.f32 0.0, %v4058_v22 }
 0x199   :  { %v267_v23 = vpop.permute.xlu0 %266 }
 0x19a   :  { %v269_v24 = vmul.f32 %v4058_v22, %v267_v23 }
 0x19c   :  { %271 = vrot.lane.b32.xlu0 %v269_v24, %s4336_s10 }
 0x1a0   :  { %527 = vrot.lane.b32.xlu0 %v4489_v9, %s4337_s28 }
 0x20e   :  { %v272_v26 = vpop.permute.xlu0 %271 }
 0x20f   :  { %v4515_v27 = vadd.f32 %v272_v26, %v264_v25 }
 0x211   :  { %4059 = vtanh.f32 %v4515_v27 }
 0x212   :  { %v528_v46 = vpop.permute.xlu0 %527 }
 0x21b   :  { %v4060_v40 = vpop.eup %4059 }
 0x21c   :  { %277 = vrot.lane.b32.xlu1 %v4060_v40, %s4335_s27 }
 0x28e   :  { %v278_v41 = vpop.permute.xlu1 %277 }
 0x28f   :  { %v280_v42 = vmul.f32 %v4058_v22, %v278_v41 }
 0x291   :  { %352 = vrot.lane.b32.xlu1 %v280_v42, %s4336_s10 }
 0x303   :  { %v353_v45 = vpop.permute.xlu1 %352 }
 0x304   :  { %3563 = vmatmul.mubr.msk.f32.vlgmr.msra.gmra.mrb[2].mxu0 %vm98_vm3, %v353_v45  ;;  %3574 = vmatmul.mubr.msk.f32.vlgmr.msra.gmra.mrb[4].mxu1 %vm98_vm3, %v353_v45 }
 0x305   :  { %3577 = vmatpush3.msk.msra.mxu0 %vm176_vm1, %v4484_v8  ;;  %3578 = vmatprep.mubr.msk.f32.mxu0 %vm4334_vm0, %v4333_v2 }
 0x306   :  { %3897 = vmatpush3.bf16.msra.mxu1 %v4519_v31  ;;  %3901 = vmatprep.subr.bf16.mxu0 %v4332_v1 }
 0x307   :  { %3898 = vmatprep.subr.bf16.mxu1 %v4332_v1  ;;  %3589 = vmatprep.mubr.msk.f32.mxu1 %vm4334_vm0, %v4333_v2 }
 0x308   :  { %3579 = vmatmul.mubr.msk.f32.vlgmr.msra.gmra.mrb[4].mxu0 %vm172_vm2, %v528_v46 }
 0x309   :  { %3903 = vmatpush3.bf16.msra.mxu0 %v4521_v35  ;;  %3600 = vmatprep.mubr.msk.f32.mxu0 %vm4334_vm0, %v4333_v2 }
 0x30a   :  { %3900 = vmatpush3.bf16.msra.mxu1 %v4524_v38  ;;  %3904 = vmatprep.subr.bf16.mxu0 %v4332_v1 }
 0x30b   :  { %3907 = vmatprep.subr.bf16.mxu1 %v4332_v1 }
 0x30d   :  { %3906 = vmatpush3.bf16.msra.mxu0 %v4528_v39 }
 0x30e   :  { %3614 = vmatprep.subr.mxu0 %v4333_v2 }
 0x3d7   :  { %v422_v48 = vpop.f32.mrb[2].mxu0  ;;  %v523_v49 = vpop.f32.mrb[4].mxu1 }
 0x3d8   :  { %v423_v50 = vadd.f32 %v422_v48, %v347_v43  ;;  %v3564_v51 = vpop.f32.mrb[3].mxu0  ;;  %v3575_v52 = vpop.f32.mrb[5].mxu1 }
 0x3da   :  { %v432_v53 = vadd.f32 %v4567_v47, %v423_v50 }
 0x3db   :  { %v597_v54 = vpop.f32.mrb[4].mxu0 }
 0x3dc   :  { %4061 = vtanh.f32 %v432_v53  ;;  %v598_v55 = vadd.f32 %v597_v54, %v523_v49  ;;  %v3580_v56 = vpop.f32.mrb[5].mxu0  ;;  %v3299_v60 = vmul.f32 -1.442695, %v432_v53 }
 0x3de   :  { %v601_v57 = vadd.f32 %v4510_v13, %v598_v55 }
 0x3e0   :  { %4063 = vtanh.f32 %v601_v57  ;;  %v3303_v61 = vmul.f32 -1.442695, %v601_v57 }
 0x3e1   :  { %4065 = vpow2.f32 %v3299_v60 }
 0x3e2   :  { %4067 = vpow2.f32 %v3303_v61 }
 0x3e6   :  { %v4062_v58 = vpop.eup %4061 }
 0x3e7   :  { %442 = vrot.lane.b32.xlu1 %v4062_v58, %s4335_s27 }
 0x3ea   :  { %v4064_v59 = vpop.eup %4063 }
 0x3eb   :  { %611 = vrot.lane.b32.xlu0 %v4064_v59, %s4335_s27  ;;  %v4066_v62 = vpop.eup %4065 }
 0x3ec   :  { %v436_v63 = vadd.f32 1.0, %v4066_v62  ;;  %v4068_v0 = vpop.eup %4067 }
 0x3ed   :  { %v605_v3 = vadd.f32 1.0, %v4068_v0 }
 0x3ee   :  { %4069 = vrcp.f32 %v436_v63 }
 0x3ef   :  { %4071 = vrcp.f32 %v605_v3 }
 0x3f8   :  { %v4070_v4 = vpop.eup %4069 }
 0x3f9   :  { %v4072_v11 = vpop.eup %4071  ;;  %v440_v15 = vmul.f32 0.0, %v4070_v4 }
 0x3fa   :  { %v609_v18 = vmul.f32 %v4072_v11, %v4515_v27 }
 0x459   :  { %v443_v5 = vpop.permute.xlu1 %442 }
 0x45a   :  { %v445_v7 = vmul.f32 %v4070_v4, %v443_v5 }
 0x45c   :  { %447 = vrot.lane.b32.xlu1 %v445_v7, %s4336_s10 }
 0x45d   :  { %v612_v12 = vpop.permute.xlu0 %611 }
 0x45e   :  { %v614_v14 = vmul.f32 %v4072_v11, %v612_v12 }
 0x460   :  { %616 = vrot.lane.b32.xlu0 %v614_v14, %s4336_s10 }
 0x4ce   :  { %v448_v16 = vpop.permute.xlu1 %447 }
 0x4cf   :  { %v4575_v17 = vadd.f32 %v448_v16, %v440_v15 }
 0x4d1   :  { %4073 = vtanh.f32 %v4575_v17 }
 0x4d2   :  { %v617_v19 = vpop.permute.xlu0 %616 }
 0x4d3   :  { %v4579_v20 = vadd.f32 %v617_v19, %v609_v18 }
 0x4d5   :  { %4075 = vtanh.f32 %v4579_v20 }
 0x4db   :  { %v4074_v21 = vpop.eup %4073 }
 0x4dc   :  { %453 = vrot.lane.b32.xlu1 %v4074_v21, %s4335_s27 }
 0x4df   :  { %v4076_v22 = vpop.eup %4075 }
 0x4e0   :  { %622 = vrot.lane.b32.xlu0 %v4076_v22, %s4335_s27 }
 0x54e   :  { %v454_v23 = vpop.permute.xlu1 %453 }
 0x54f   :  { %v4584_v24 = vmul.f32 %v4070_v4, %v454_v23 }
 0x551   :  { %627 = vrot.lane.b32.xlu1 %v4584_v24, %s4336_s10 }
 0x552   :  { %v623_v25 = vpop.permute.xlu0 %622 }
 0x553   :  { %v625_v26 = vmul.f32 %v4072_v11, %v623_v25 }
 0x555   :  { %702 = vrot.lane.b32.xlu0 %v625_v26, %s4336_s10  ;;  %871 = vrot.lane.b32.xlu1 %v4489_v9, %s4338_s14 }
 0x5c3   :  { %v4590_v27 = vpop.permute.xlu1 %627 }
 0x5c4   :  { %3590 = vmatmul.mubr.msk.f32.vlgmr.msra.gmra.mrb[6].mxu1 %vm98_vm3, %v4590_v27 }
 0x5c5   :  { %3909 = vmatpush3.bf16.msra.mxu1 %v4476_v6  ;;  %3611 = vmatprep.mubr.msk.f32.mxu1 %vm4334_vm0, %v4333_v2 }
 0x5c6   :  { %3910 = vmatprep.subr.bf16.mxu1 %v4332_v1 }
 0x5c7   :  { %v703_v28 = vpop.permute.xlu0 %702  ;;  %v872_v29 = vpop.permute.xlu1 %871 }
 0x5c8   :  { %3601 = vmatmul.mubr.msk.f32.vlgmr.msra.gmra.mrb[6].mxu0 %vm98_vm3, %v703_v28 }
 0x5c9   :  { %3912 = vmatpush3.bf16.msra.mxu1 %v4494_v10  ;;  %3615 = vmatpush3.msk.msra.mxu0 %vm176_vm1, %v4484_v8 }
 0x5ca   :  { %3616 = vmatprep.mubr.msk.f32.mxu0 %vm4334_vm0, %v4333_v2  ;;  %3913 = vmatprep.subr.bf16.mxu0 %v4332_v1 }
 0x5cb   :  { %3919 = vmatprep.subr.bf16.mxu1 %v4332_v1 }
 0x5cc   :  { %3612 = vmatmul.mubr.msk.f32.vlgmr.msra.gmra.mrb[8].mxu1 %vm98_vm3, %v703_v28  ;;  %3617 = vmatmul.mubr.msk.f32.vlgmr.msra.gmra.mrb[8].mxu0 %vm172_vm2, %v872_v29 }
 0x5cd   :  { %3915 = vmatpush3.bf16.msra.mxu0 %v4519_v31  ;;  %3921 = vmatpush3.bf16.msra.mxu1 %v4521_v35 }
 0x5ce   :  { %3916 = vmatprep.subr.bf16.mxu0 %v4332_v1  ;;  %3627 = vmatprep.mubr.msk.f32.mxu0 %vm4334_vm0, %v4333_v2 }
 0x5cf   :  { %3922 = vmatprep.subr.bf16.mxu1 %v4332_v1  ;;  %3638 = vmatprep.mubr.msk.f32.mxu1 %vm4334_vm0, %v4333_v2 }
 0x5d1   :  { %3918 = vmatpush3.bf16.msra.mxu0 %v4524_v38  ;;  %3924 = vmatpush3.bf16.msra.mxu1 %v4528_v39 }
 0x5d2   :  { %3925 = vmatprep.subr.bf16.mxu0 %v4332_v1  ;;  %3652 = vmatprep.subr.mxu1 %v4333_v2 }
 0x697   :  { %v697_v30 = vpop.f32.mrb[6].mxu1 }
 0x698   :  { %v3591_v32 = vpop.f32.mrb[7].mxu1 }
 0x69b   :  { %v772_v33 = vpop.f32.mrb[6].mxu0 }
 0x69c   :  { %v773_v34 = vadd.f32 %v772_v33, %v697_v30  ;;  %v3602_v36 = vpop.f32.mrb[7].mxu0 }
 0x69e   :  { %v776_v37 = vadd.f32 %v4567_v47, %v773_v34 }
 0x69f   :  { %v867_v40 = vpop.f32.mrb[8].mxu1  ;;  %v941_v41 = vpop.f32.mrb[8].mxu0 }
 0x6a0   :  { %4077 = vtanh.f32 %v776_v37  ;;  %v3613_v42 = vpop.f32.mrb[9].mxu1  ;;  %v942_v43 = vadd.f32 %v941_v41, %v867_v40  ;;  %v3618_v44 = vpop.f32.mrb[9].mxu0  ;;  %v3306_v49 = vmul.f32 -1.442695, %v776_v37 }
 0x6a2   :  { %v945_v45 = vadd.f32 %v4510_v13, %v942_v43 }
 0x6a4   :  { %4079 = vtanh.f32 %v945_v45  ;;  %v3310_v50 = vmul.f32 -1.442695, %v945_v45 }
 0x6a5   :  { %4081 = vpow2.f32 %v3306_v49 }
 0x6a6   :  { %4083 = vpow2.f32 %v3310_v50 }
 0x6aa   :  { %v4078_v46 = vpop.eup %4077 }
 0x6ab   :  { %786 = vrot.lane.b32.xlu0 %v4078_v46, %s4335_s27 }
 0x6ae   :  { %v4080_v48 = vpop.eup %4079 }
 0x6af   :  { %955 = vrot.lane.b32.xlu1 %v4080_v48, %s4335_s27  ;;  %v4082_v51 = vpop.eup %4081 }
 0x6b0   :  { %v780_v52 = vadd.f32 1.0, %v4082_v51  ;;  %v4084_v53 = vpop.eup %4083 }
 0x6b1   :  { %v949_v54 = vadd.f32 1.0, %v4084_v53 }
 0x6b2   :  { %4085 = vrcp.f32 %v780_v52 }
 0x6b3   :  { %4087 = vrcp.f32 %v949_v54 }
 0x6bc   :  { %v4086_v55 = vpop.eup %4085 }
 0x6bd   :  { %v4088_v58 = vpop.eup %4087  ;;  %v784_v61 = vmul.f32 %v4086_v55, %v4575_v17 }
 0x6be   :  { %v953_v0 = vmul.f32 %v4088_v58, %v4579_v20 }
 0x71d   :  { %v787_v56 = vpop.permute.xlu0 %786 }
 0x71e   :  { %v789_v57 = vmul.f32 %v4086_v55, %v787_v56 }
 0x720   :  { %791 = vrot.lane.b32.xlu0 %v789_v57, %s4336_s10 }
 0x721   :  { %v956_v59 = vpop.permute.xlu1 %955 }
 0x722   :  { %v958_v60 = vmul.f32 %v4088_v58, %v956_v59 }
 0x724   :  { %960 = vrot.lane.b32.xlu1 %v958_v60, %s4336_s10 }
 0x792   :  { %v792_v62 = vpop.permute.xlu0 %791 }
 0x793   :  { %v4627_v63 = vadd.f32 %v792_v62, %v784_v61 }
 0x795   :  { %4089 = vtanh.f32 %v4627_v63 }
 0x796   :  { %v961_v3 = vpop.permute.xlu1 %960 }
 0x797   :  { %v4631_v4 = vadd.f32 %v961_v3, %v953_v0 }
 0x799   :  { %4091 = vtanh.f32 %v4631_v4 }
 0x79f   :  { %v4090_v5 = vpop.eup %4089 }
 0x7a0   :  { %797 = vrot.lane.b32.xlu0 %v4090_v5, %s4335_s27 }
 0x7a3   :  { %v4092_v7 = vpop.eup %4091 }
 0x7a4   :  { %966 = vrot.lane.b32.xlu1 %v4092_v7, %s4335_s27 }
 0x812   :  { %v798_v11 = vpop.permute.xlu0 %797 }
 0x813   :  { %v4636_v12 = vmul.f32 %v4086_v55, %v798_v11 }
 0x815   :  { %971 = vrot.lane.b32.xlu0 %v4636_v12, %s4336_s10 }
 0x816   :  { %v967_v14 = vpop.permute.xlu1 %966 }
 0x817   :  { %v969_v15 = vmul.f32 %v4088_v58, %v967_v14 }
 0x819   :  { %1046 = vrot.lane.b32.xlu1 %v969_v15, %s4336_s10  ;;  %1215 = vrot.lane.b32.xlu0 %v4489_v9, %s4339_s15 }
 0x887   :  { %v4642_v16 = vpop.permute.xlu0 %971 }
 0x888   :  { %3628 = vmatmul.mubr.msk.f32.vlgmr.msra.gmra.mrb[10].mxu0 %vm98_vm3, %v4642_v16 }
 0x889   :  { %3927 = vmatpush3.bf16.msra.mxu0 %v4476_v6  ;;  %3649 = vmatprep.mubr.msk.f32.mxu0 %vm4334_vm0, %v4333_v2 }
 0x88a   :  { %3928 = vmatprep.subr.bf16.mxu0 %v4332_v1 }
 0x88b   :  { %v1047_v17 = vpop.permute.xlu1 %1046  ;;  %v1216_v18 = vpop.permute.xlu0 %1215 }
 0x88c   :  { %3639 = vmatmul.mubr.msk.f32.vlgmr.msra.gmra.mrb[10].mxu1 %vm98_vm3, %v1047_v17 }
 0x88d   :  { %3930 = vmatpush3.bf16.msra.mxu0 %v4494_v10  ;;  %3653 = vmatpush3.msk.msra.mxu1 %vm176_vm1, %v4484_v8 }
 0x88e   :  { %3654 = vmatprep.mubr.msk.f32.mxu1 %vm4334_vm0, %v4333_v2  ;;  %3931 = vmatprep.subr.bf16.mxu1 %v4332_v1 }
 0x88f   :  { %3937 = vmatprep.subr.bf16.mxu0 %v4332_v1 }
 0x890   :  { %3650 = vmatmul.mubr.msk.f32.vlgmr.msra.gmra.mrb[12].mxu0 %vm98_vm3, %v1047_v17  ;;  %3655 = vmatmul.mubr.msk.f32.vlgmr.msra.gmra.mrb[12].mxu1 %vm172_vm2, %v1216_v18 }
 0x891   :  { %3933 = vmatpush3.bf16.msra.mxu1 %v4519_v31  ;;  %3939 = vmatpush3.bf16.msra.mxu0 %v4521_v35 }
 0x892   :  { %3934 = vmatprep.subr.bf16.mxu1 %v4332_v1  ;;  %3665 = vmatprep.mubr.msk.f32.mxu1 %vm4334_vm0, %v4333_v2 }
 0x893   :  { %3940 = vmatprep.subr.bf16.mxu0 %v4332_v1  ;;  %3676 = vmatprep.mubr.msk.f32.mxu0 %vm4334_vm0, %v4333_v2 }
 0x895   :  { %3936 = vmatpush3.bf16.msra.mxu1 %v4524_v38  ;;  %3942 = vmatpush3.bf16.msra.mxu0 %v4528_v39 }
 0x896   :  { %3943 = vmatprep.subr.bf16.mxu1 %v4332_v1  ;;  %3690 = vmatprep.subr.mxu0 %v4333_v2 }
 0x95b   :  { %v1041_v19 = vpop.f32.mrb[10].mxu0 }
 0x95c   :  { %v3629_v20 = vpop.f32.mrb[11].mxu0 }
 0x95f   :  { %v1116_v21 = vpop.f32.mrb[10].mxu1 }
 0x960   :  { %v1117_v22 = vadd.f32 %v1116_v21, %v1041_v19  ;;  %v3640_v23 = vpop.f32.mrb[11].mxu1 }
 0x962   :  { %v1120_v25 = vadd.f32 %v4567_v47, %v1117_v22 }
 0x963   :  { %v1211_v26 = vpop.f32.mrb[12].mxu0  ;;  %v1285_v28 = vpop.f32.mrb[12].mxu1 }
 0x964   :  { %4093 = vtanh.f32 %v1120_v25  ;;  %v3651_v29 = vpop.f32.mrb[13].mxu0  ;;  %v1286_v30 = vadd.f32 %v1285_v28, %v1211_v26  ;;  %v3656_v32 = vpop.f32.mrb[13].mxu1  ;;  %v3313_v37 = vmul.f32 -1.442695, %v1120_v25 }
 0x966   :  { %v1289_v33 = vadd.f32 %v4510_v13, %v1286_v30 }
 0x968   :  { %4095 = vtanh.f32 %v1289_v33  ;;  %v3317_v40 = vmul.f32 -1.442695, %v1289_v33 }
 0x969   :  { %4097 = vpow2.f32 %v3313_v37 }
 0x96a   :  { %4099 = vpow2.f32 %v3317_v40 }
 0x96e   :  { %v4094_v34 = vpop.eup %4093 }
 0x96f   :  { %1130 = vrot.lane.b32.xlu1 %v4094_v34, %s4335_s27 }
 0x972   :  { %v4096_v36 = vpop.eup %4095 }
 0x973   :  { %1299 = vrot.lane.b32.xlu0 %v4096_v36, %s4335_s27  ;;  %v4098_v41 = vpop.eup %4097 }
 0x974   :  { %v1124_v42 = vadd.f32 1.0, %v4098_v41  ;;  %v4100_v43 = vpop.eup %4099 }
 0x975   :  { %v1293_v44 = vadd.f32 1.0, %v4100_v43 }
 0x976   :  { %4101 = vrcp.f32 %v1124_v42 }
 0x977   :  { %4103 = vrcp.f32 %v1293_v44 }
 0x980   :  { %v4102_v45 = vpop.eup %4101 }
 0x981   :  { %v4104_v49 = vpop.eup %4103  ;;  %v1128_v52 = vmul.f32 %v4102_v45, %v4627_v63 }
 0x982   :  { %v1297_v55 = vmul.f32 %v4104_v49, %v4631_v4 }
 0x9e1   :  { %v1131_v46 = vpop.permute.xlu1 %1130 }
 0x9e2   :  { %v1133_v48 = vmul.f32 %v4102_v45, %v1131_v46 }
 0x9e4   :  { %1135 = vrot.lane.b32.xlu1 %v1133_v48, %s4336_s10 }
 0x9e5   :  { %v1300_v50 = vpop.permute.xlu0 %1299 }
 0x9e6   :  { %v1302_v51 = vmul.f32 %v4104_v49, %v1300_v50 }
 0x9e8   :  { %1304 = vrot.lane.b32.xlu0 %v1302_v51, %s4336_s10 }
 0xa56   :  { %v1136_v53 = vpop.permute.xlu1 %1135 }
 0xa57   :  { %v4679_v54 = vadd.f32 %v1136_v53, %v1128_v52 }
 0xa59   :  { %4105 = vtanh.f32 %v4679_v54 }
 0xa5a   :  { %v1305_v56 = vpop.permute.xlu0 %1304 }
 0xa5b   :  { %v4683_v57 = vadd.f32 %v1305_v56, %v1297_v55 }
 0xa5d   :  { %4107 = vtanh.f32 %v4683_v57 }
 0xa63   :  { %v4106_v58 = vpop.eup %4105 }
 0xa64   :  { %1141 = vrot.lane.b32.xlu1 %v4106_v58, %s4335_s27 }
 0xa67   :  { %v4108_v59 = vpop.eup %4107 }
 0xa68   :  { %1310 = vrot.lane.b32.xlu0 %v4108_v59, %s4335_s27 }
 0xad6   :  { %v1142_v60 = vpop.permute.xlu1 %1141 }
 0xad7   :  { %v4688_v61 = vmul.f32 %v4102_v45, %v1142_v60 }
 0xad9   :  { %1315 = vrot.lane.b32.xlu1 %v4688_v61, %s4336_s10 }
 0xada   :  { %v1311_v62 = vpop.permute.xlu0 %1310 }
 0xadb   :  { %v1313_v63 = vmul.f32 %v4104_v49, %v1311_v62 }
 0xadd   :  { %1390 = vrot.lane.b32.xlu0 %v1313_v63, %s4336_s10  ;;  %1559 = vrot.lane.b32.xlu1 %v4489_v9, %s4340_s16 }
 0xb4b   :  { %v4694_v0 = vpop.permute.xlu1 %1315 }
 0xb4c   :  { %3666 = vmatmul.mubr.msk.f32.vlgmr.msra.gmra.mrb[14].mxu1 %vm98_vm3, %v4694_v0 }
 0xb4d   :  { %3945 = vmatpush3.bf16.msra.mxu1 %v4476_v6  ;;  %3687 = vmatprep.mubr.msk.f32.mxu1 %vm4334_vm0, %v4333_v2 }
 0xb4e   :  { %3946 = vmatprep.subr.bf16.mxu1 %v4332_v1 }
 0xb4f   :  { %v1391_v3 = vpop.permute.xlu0 %1390  ;;  %v1560_v4 = vpop.permute.xlu1 %1559 }
 0xb50   :  { %3677 = vmatmul.mubr.msk.f32.vlgmr.msra.gmra.mrb[14].mxu0 %vm98_vm3, %v1391_v3 }
 0xb51   :  { %3948 = vmatpush3.bf16.msra.mxu1 %v4494_v10  ;;  %3691 = vmatpush3.msk.msra.mxu0 %vm176_vm1, %v4484_v8 }
 0xb52   :  { %3692 = vmatprep.mubr.msk.f32.mxu0 %vm4334_vm0, %v4333_v2  ;;  %3949 = vmatprep.subr.bf16.mxu0 %v4332_v1 }
 0xb53   :  { %3955 = vmatprep.subr.bf16.mxu1 %v4332_v1 }
 0xb54   :  { %3688 = vmatmul.mubr.msk.f32.vlgmr.msra.gmra.mrb[16].mxu1 %vm98_vm3, %v1391_v3  ;;  %3693 = vmatmul.mubr.msk.f32.vlgmr.msra.gmra.mrb[16].mxu0 %vm172_vm2, %v1560_v4 }
 0xb55   :  { %3951 = vmatpush3.bf16.msra.mxu0 %v4519_v31  ;;  %3957 = vmatpush3.bf16.msra.mxu1 %v4521_v35 }
 0xb56   :  { %3952 = vmatprep.subr.bf16.mxu0 %v4332_v1  ;;  %3703 = vmatprep.mubr.msk.f32.mxu0 %vm4334_vm0, %v4333_v2 }
 0xb57   :  { %3958 = vmatprep.subr.bf16.mxu1 %v4332_v1  ;;  %3714 = vmatprep.mubr.msk.f32.mxu1 %vm4334_vm0, %v4333_v2 }
 0xb59   :  { %3954 = vmatpush3.bf16.msra.mxu0 %v4524_v38  ;;  %3960 = vmatpush3.bf16.msra.mxu1 %v4528_v39 }
 0xb5a   :  { %3961 = vmatprep.subr.bf16.mxu0 %v4332_v1  ;;  %3728 = vmatprep.subr.mxu1 %v4333_v2 }
 0xc1f   :  { %v1385_v5 = vpop.f32.mrb[14].mxu1 }
 0xc20   :  { %v3667_v7 = vpop.f32.mrb[15].mxu1 }
 0xc23   :  { %v1460_v11 = vpop.f32.mrb[14].mxu0 }
 0xc24   :  { %v1461_v14 = vadd.f32 %v1460_v11, %v1385_v5  ;;  %v3678_v15 = vpop.f32.mrb[15].mxu0 }
 0xc26   :  { %v1464_v17 = vadd.f32 %v4567_v47, %v1461_v14 }
 0xc27   :  { %v1555_v18 = vpop.f32.mrb[16].mxu1  ;;  %v1629_v19 = vpop.f32.mrb[16].mxu0 }
 0xc28   :  { %4109 = vtanh.f32 %v1464_v17  ;;  %v3689_v20 = vpop.f32.mrb[17].mxu1  ;;  %v1630_v21 = vadd.f32 %v1629_v19, %v1555_v18  ;;  %v3694_v22 = vpop.f32.mrb[17].mxu0  ;;  %v3320_v28 = vmul.f32 -1.442695, %v1464_v17 }
 0xc2a   :  { %v1633_v23 = vadd.f32 %v4510_v13, %v1630_v21 }
 0xc2c   :  { %4111 = vtanh.f32 %v1633_v23  ;;  %v3324_v29 = vmul.f32 -1.442695, %v1633_v23 }
 0xc2d   :  { %4113 = vpow2.f32 %v3320_v28 }
 0xc2e   :  { %4115 = vpow2.f32 %v3324_v29 }
 0xc32   :  { %v4110_v25 = vpop.eup %4109 }
 0xc33   :  { %1474 = vrot.lane.b32.xlu0 %v4110_v25, %s4335_s27 }
 0xc36   :  { %v4112_v26 = vpop.eup %4111 }
 0xc37   :  { %1643 = vrot.lane.b32.xlu1 %v4112_v26, %s4335_s27  ;;  %v4114_v30 = vpop.eup %4113 }
 0xc38   :  { %v1468_v32 = vadd.f32 1.0, %v4114_v30  ;;  %v4116_v33 = vpop.eup %4115 }
 0xc39   :  { %v1637_v34 = vadd.f32 1.0, %v4116_v33 }
 0xc3a   :  { %4117 = vrcp.f32 %v1468_v32 }
 0xc3b   :  { %4119 = vrcp.f32 %v1637_v34 }
 0xc44   :  { %v4118_v36 = vpop.eup %4117 }
 0xc45   :  { %v4120_v41 = vpop.eup %4119  ;;  %v1472_v44 = vmul.f32 %v4118_v36, %v4679_v54 }
 0xc46   :  { %v1641_v48 = vmul.f32 %v4120_v41, %v4683_v57 }
 0xca5   :  { %v1475_v37 = vpop.permute.xlu0 %1474 }
 0xca6   :  { %v1477_v40 = vmul.f32 %v4118_v36, %v1475_v37 }
 0xca8   :  { %1479 = vrot.lane.b32.xlu0 %v1477_v40, %s4336_s10 }
 0xca9   :  { %v1644_v42 = vpop.permute.xlu1 %1643 }
 0xcaa   :  { %v1646_v43 = vmul.f32 %v4120_v41, %v1644_v42 }
 0xcac   :  { %1648 = vrot.lane.b32.xlu1 %v1646_v43, %s4336_s10 }
 0xd1a   :  { %v1480_v45 = vpop.permute.xlu0 %1479 }
 0xd1b   :  { %v4731_v46 = vadd.f32 %v1480_v45, %v1472_v44 }
 0xd1d   :  { %4121 = vtanh.f32 %v4731_v46 }
 0xd1e   :  { %v1649_v49 = vpop.permute.xlu1 %1648 }
 0xd1f   :  { %v4735_v50 = vadd.f32 %v1649_v49, %v1641_v48 }
 0xd21   :  { %4123 = vtanh.f32 %v4735_v50 }
 0xd27   :  { %v4122_v51 = vpop.eup %4121 }
 0xd28   :  { %1485 = vrot.lane.b32.xlu0 %v4122_v51, %s4335_s27 }
 0xd2b   :  { %v4124_v52 = vpop.eup %4123 }
 0xd2c   :  { %1654 = vrot.lane.b32.xlu1 %v4124_v52, %s4335_s27 }
 0xd9a   :  { %v1486_v53 = vpop.permute.xlu0 %1485 }
 0xd9b   :  { %v4740_v54 = vmul.f32 %v4118_v36, %v1486_v53 }
 0xd9d   :  { %1659 = vrot.lane.b32.xlu0 %v4740_v54, %s4336_s10 }
 0xd9e   :  { %v1655_v55 = vpop.permute.xlu1 %1654 }
 0xd9f   :  { %v1657_v56 = vmul.f32 %v4120_v41, %v1655_v55 }
 0xda1   :  { %1734 = vrot.lane.b32.xlu1 %v1657_v56, %s4336_s10  ;;  %1903 = vrot.lane.b32.xlu0 %v4489_v9, %s4341_s4 }
 0xe0f   :  { %v4746_v57 = vpop.permute.xlu0 %1659 }
 0xe10   :  { %3704 = vmatmul.mubr.msk.f32.vlgmr.msra.gmra.mrb[18].mxu0 %vm98_vm3, %v4746_v57 }
 0xe11   :  { %3963 = vmatpush3.bf16.msra.mxu0 %v4476_v6  ;;  %3725 = vmatprep.mubr.msk.f32.mxu0 %vm4334_vm0, %v4333_v2 }
 0xe12   :  { %3964 = vmatprep.subr.bf16.mxu0 %v4332_v1 }
 0xe13   :  { %v1735_v58 = vpop.permute.xlu1 %1734  ;;  %v1904_v59 = vpop.permute.xlu0 %1903 }
 0xe14   :  { %3715 = vmatmul.mubr.msk.f32.vlgmr.msra.gmra.mrb[18].mxu1 %vm98_vm3, %v1735_v58 }
 0xe15   :  { %3966 = vmatpush3.bf16.msra.mxu0 %v4494_v10  ;;  %3729 = vmatpush3.msk.msra.mxu1 %vm176_vm1, %v4484_v8 }
 0xe16   :  { %3730 = vmatprep.mubr.msk.f32.mxu1 %vm4334_vm0, %v4333_v2  ;;  %3967 = vmatprep.subr.bf16.mxu1 %v4332_v1 }
 0xe17   :  { %3973 = vmatprep.subr.bf16.mxu0 %v4332_v1 }
 0xe18   :  { %3726 = vmatmul.mubr.msk.f32.vlgmr.msra.gmra.mrb[20].mxu0 %vm98_vm3, %v1735_v58  ;;  %3731 = vmatmul.mubr.msk.f32.vlgmr.msra.gmra.mrb[20].mxu1 %vm172_vm2, %v1904_v59 }
 0xe19   :  { %3969 = vmatpush3.bf16.msra.mxu1 %v4519_v31  ;;  %3975 = vmatpush3.bf16.msra.mxu0 %v4521_v35 }
 0xe1a   :  { %3970 = vmatprep.subr.bf16.mxu1 %v4332_v1  ;;  %3741 = vmatprep.mubr.msk.f32.mxu1 %vm4334_vm0, %v4333_v2 }
 0xe1b   :  { %3976 = vmatprep.subr.bf16.mxu0 %v4332_v1  ;;  %3752 = vmatprep.mubr.msk.f32.mxu0 %vm4334_vm0, %v4333_v2 }
 0xe1d   :  { %3972 = vmatpush3.bf16.msra.mxu1 %v4524_v38  ;;  %3978 = vmatpush3.bf16.msra.mxu0 %v4528_v39 }
 0xe1e   :  { %3979 = vmatprep.subr.bf16.mxu1 %v4332_v1  ;;  %3766 = vmatprep.subr.mxu0 %v4333_v2 }
 0xee3   :  { %v1729_v60 = vpop.f32.mrb[18].mxu0 }
 0xee4   :  { %v3705_v62 = vpop.f32.mrb[19].mxu0 }
 0xee7   :  { %v1804_v63 = vpop.f32.mrb[18].mxu1 }
 0xee8   :  { %v1805_v3 = vadd.f32 %v1804_v63, %v1729_v60  ;;  %v3716_v4 = vpop.f32.mrb[19].mxu1 }
 0xeea   :  { %v1808_v5 = vadd.f32 %v4567_v47, %v1805_v3 }
 0xeeb   :  { %v1899_v7 = vpop.f32.mrb[20].mxu0  ;;  %v1973_v11 = vpop.f32.mrb[20].mxu1 }
 0xeec   :  { %4125 = vtanh.f32 %v1808_v5  ;;  %v3727_v14 = vpop.f32.mrb[21].mxu0  ;;  %v1974_v15 = vadd.f32 %v1973_v11, %v1899_v7  ;;  %v3732_v17 = vpop.f32.mrb[21].mxu1  ;;  %v3327_v21 = vmul.f32 -1.442695, %v1808_v5 }
 0xeee   :  { %v1977_v18 = vadd.f32 %v4510_v13, %v1974_v15 }
 0xef0   :  { %4127 = vtanh.f32 %v1977_v18  ;;  %v3331_v22 = vmul.f32 -1.442695, %v1977_v18 }
 0xef1   :  { %4129 = vpow2.f32 %v3327_v21 }
 0xef2   :  { %4131 = vpow2.f32 %v3331_v22 }
 0xef6   :  { %v4126_v19 = vpop.eup %4125 }
 0xef7   :  { %1818 = vrot.lane.b32.xlu1 %v4126_v19, %s4335_s27 }
 0xefa   :  { %v4128_v20 = vpop.eup %4127 }
 0xefb   :  { %1987 = vrot.lane.b32.xlu0 %v4128_v20, %s4335_s27  ;;  %v4130_v23 = vpop.eup %4129 }
 0xefc   :  { %v1812_v25 = vadd.f32 1.0, %v4130_v23  ;;  %v4132_v26 = vpop.eup %4131 }
 0xefd   :  { %v1981_v28 = vadd.f32 1.0, %v4132_v26 }
 0xefe   :  { %4133 = vrcp.f32 %v1812_v25 }
 0xeff   :  { %4135 = vrcp.f32 %v1981_v28 }
 0xf08   :  { %v4134_v29 = vpop.eup %4133 }
 0xf09   :  { %v4136_v33 = vpop.eup %4135  ;;  %v1816_v37 = vmul.f32 %v4134_v29, %v4731_v46 }
 0xf0a   :  { %v1985_v42 = vmul.f32 %v4136_v33, %v4735_v50 }
 0xf69   :  { %v1819_v30 = vpop.permute.xlu1 %1818 }
 0xf6a   :  { %v1821_v32 = vmul.f32 %v4134_v29, %v1819_v30 }
 0xf6c   :  { %1823 = vrot.lane.b32.xlu1 %v1821_v32, %s4336_s10 }
 0xf6d   :  { %v1988_v34 = vpop.permute.xlu0 %1987 }
 0xf6e   :  { %v1990_v36 = vmul.f32 %v4136_v33, %v1988_v34 }
 0xf70   :  { %1992 = vrot.lane.b32.xlu0 %v1990_v36, %s4336_s10 }
 0xfde   :  { %v1824_v40 = vpop.permute.xlu1 %1823 }
 0xfdf   :  { %v4783_v41 = vadd.f32 %v1824_v40, %v1816_v37 }
 0xfe1   :  { %4137 = vtanh.f32 %v4783_v41 }
 0xfe2   :  { %v1993_v43 = vpop.permute.xlu0 %1992 }
 0xfe3   :  { %v4787_v44 = vadd.f32 %v1993_v43, %v1985_v42 }
 0xfe5   :  { %4139 = vtanh.f32 %v4787_v44 }
 0xfeb   :  { %v4138_v45 = vpop.eup %4137 }
 0xfec   :  { %1829 = vrot.lane.b32.xlu1 %v4138_v45, %s4335_s27 }
 0xfef   :  { %v4140_v48 = vpop.eup %4139 }
 0xff0   :  { %1998 = vrot.lane.b32.xlu0 %v4140_v48, %s4335_s27 }
0x105e   :  { %v1830_v49 = vpop.permute.xlu1 %1829 }
0x105f   :  { %v4792_v46 = vmul.f32 %v4134_v29, %v1830_v49 }
0x1061   :  { %2003 = vrot.lane.b32.xlu1 %v4792_v46, %s4336_s10 }
0x1062   :  { %v1999_v51 = vpop.permute.xlu0 %1998 }
0x1063   :  { %v2001_v52 = vmul.f32 %v4136_v33, %v1999_v51  ;;  %v4230_v51 = vld [vmem:[%s4993_s1] sm:$0xf] }
0x1065   :  { %2078 = vrot.lane.b32.xlu0 %v2001_v52, %s4336_s10  ;;  %2247 = vrot.lane.b32.xlu1 %v4489_v9, %s4342_s22 }
0x10d3   :  { %v4798_v50 = vpop.permute.xlu1 %2003 }
0x10d4   :  { %3742 = vmatmul.mubr.msk.f32.vlgmr.msra.gmra.mrb[22].mxu1 %vm98_vm3, %v4798_v50 }
0x10d5   :  { %3981 = vmatpush3.bf16.msra.mxu1 %v4476_v6  ;;  %3763 = vmatprep.mubr.msk.f32.mxu1 %vm4334_vm0, %v4333_v2 }
0x10d6   :  { %3982 = vmatprep.subr.bf16.mxu1 %v4332_v1 }
0x10d7   :  { %v2079_v53 = vpop.permute.xlu0 %2078  ;;  %v2248_v9 = vpop.permute.xlu1 %2247 }
0x10d8   :  { %3753 = vmatmul.mubr.msk.f32.vlgmr.msra.gmra.mrb[22].mxu0 %vm98_vm3, %v2079_v53 }
0x10d9   :  { %3984 = vmatpush3.bf16.msra.mxu1 %v4494_v10  ;;  %3767 = vmatpush3.msk.msra.mxu0 %vm176_vm1, %v4484_v8 }
0x10da   :  { %3768 = vmatprep.mubr.msk.f32.mxu0 %vm4334_vm0, %v4333_v2  ;;  %3985 = vmatprep.subr.bf16.mxu0 %v4332_v1 }
0x10db   :  { %3991 = vmatprep.subr.bf16.mxu1 %v4332_v1 }
0x10dc   :  { %3764 = vmatmul.mubr.msk.f32.vlgmr.msra.gmra.mrb[24].mxu1 %vm98_vm3, %v2079_v53  ;;  %3769 = vmatmul.mubr.msk.f32.vlgmr.msra.gmra.mrb[24].mxu0 %vm172_vm2, %v2248_v9 }
0x10dd   :  { %3987 = vmatpush3.bf16.msra.mxu0 %v4519_v31  ;;  %3993 = vmatpush3.bf16.msra.mxu1 %v4521_v35 }
0x10de   :  { %3988 = vmatprep.subr.bf16.mxu0 %v4332_v1  ;;  %3779 = vmatprep.mubr.msk.f32.mxu0 %vm4334_vm0, %v4333_v2 }
0x10df   :  { %3994 = vmatprep.subr.bf16.mxu1 %v4332_v1  ;;  %3790 = vmatprep.mubr.msk.f32.mxu1 %vm4334_vm0, %v4333_v2 }
0x10e1   :  { %3990 = vmatpush3.bf16.msra.mxu0 %v4524_v38  ;;  %3996 = vmatpush3.bf16.msra.mxu1 %v4528_v39 }
0x10e2   :  { %3997 = vmatprep.subr.bf16.mxu0 %v4332_v1  ;;  %3804 = vmatprep.subr.mxu1 %v4333_v2 }
0x11a7   :  { %v2073_v8 = vpop.f32.mrb[22].mxu1 }
0x11a8   :  { %v3743_v55 = vpop.f32.mrb[23].mxu1 }
0x11ab   :  { %v2148_v56 = vpop.f32.mrb[22].mxu0 }
0x11ac   :  { %v2149_v58 = vadd.f32 %v2148_v56, %v2073_v8  ;;  %v3754_v59 = vpop.f32.mrb[23].mxu0 }
0x11ae   :  { %v2152_v60 = vadd.f32 %v4567_v47, %v2149_v58 }
0x11af   :  { %v2243_v62 = vpop.f32.mrb[24].mxu1  ;;  %v2317_v63 = vpop.f32.mrb[24].mxu0 }
0x11b0   :  { %4141 = vtanh.f32 %v2152_v60  ;;  %v3765_v3 = vpop.f32.mrb[25].mxu1  ;;  %v2318_v4 = vadd.f32 %v2317_v63, %v2243_v62  ;;  %v3770_v5 = vpop.f32.mrb[25].mxu0  ;;  %v3334_v15 = vmul.f32 -1.442695, %v2152_v60 }
0x11b2   :  { %v2321_v7 = vadd.f32 %v4510_v13, %v2318_v4 }
0x11b4   :  { %4143 = vtanh.f32 %v2321_v7  ;;  %v3338_v17 = vmul.f32 -1.442695, %v2321_v7 }
0x11b5   :  { %4145 = vpow2.f32 %v3334_v15 }
0x11b6   :  { %4147 = vpow2.f32 %v3338_v17 }
0x11ba   :  { %v4142_v11 = vpop.eup %4141 }
0x11bb   :  { %2162 = vrot.lane.b32.xlu0 %v4142_v11, %s4335_s27 }
0x11be   :  { %v4144_v14 = vpop.eup %4143 }
0x11bf   :  { %2331 = vrot.lane.b32.xlu1 %v4144_v14, %s4335_s27  ;;  %v4146_v18 = vpop.eup %4145 }
0x11c0   :  { %v2156_v19 = vadd.f32 1.0, %v4146_v18  ;;  %v4148_v20 = vpop.eup %4147 }
0x11c1   :  { %v2325_v21 = vadd.f32 1.0, %v4148_v20 }
0x11c2   :  { %4149 = vrcp.f32 %v2156_v19 }
0x11c3   :  { %4151 = vrcp.f32 %v2325_v21 }
0x11cc   :  { %v4150_v22 = vpop.eup %4149 }
0x11cd   :  { %v4152_v25 = vpop.eup %4151  ;;  %v2160_v29 = vmul.f32 %v4150_v22, %v4783_v41 }
0x11ce   :  { %v2329_v33 = vmul.f32 %v4152_v25, %v4787_v44  ;;  %v4229_v44 = vld [vmem:[%s4992_s0] sm:$0xff] }
0x122d   :  { %v2163_v23 = vpop.permute.xlu0 %2162 }
0x122e   :  { %v2165_v13 = vmul.f32 %v4150_v22, %v2163_v23 }
0x1230   :  { %2167 = vrot.lane.b32.xlu0 %v2165_v13, %s4336_s10  ;;  %v2865_v13 = vld [vmem:[#allocation8] sm:$0xff] }
0x1231   :  { %v2332_v26 = vpop.permute.xlu1 %2331 }
0x1232   :  { %v2334_v28 = vmul.f32 %v4152_v25, %v2332_v26 }
0x1234   :  { %2336 = vrot.lane.b32.xlu1 %v2334_v28, %s4336_s10 }
0x12a2   :  { %v2168_v30 = vpop.permute.xlu0 %2167 }
0x12a3   :  { %v4835_v32 = vadd.f32 %v2168_v30, %v2160_v29 }
0x12a5   :  { %4153 = vtanh.f32 %v4835_v32 }
0x12a6   :  { %v2337_v34 = vpop.permute.xlu1 %2336 }
0x12a7   :  { %v4839_v36 = vadd.f32 %v2337_v34, %v2329_v33 }
0x12a9   :  { %4155 = vtanh.f32 %v4839_v36 }
0x12af   :  { %v4154_v37 = vpop.eup %4153 }
0x12b0   :  { %2173 = vrot.lane.b32.xlu0 %v4154_v37, %s4335_s27  ;;  %v2868_v37 = vld [vmem:[#allocation8 + $0x18] sm:$0xff] }
0x12b3   :  { %v4156_v40 = vpop.eup %4155 }
0x12b4   :  { %2342 = vrot.lane.b32.xlu1 %v4156_v40, %s4335_s27 }
0x1322   :  { %v2174_v42 = vpop.permute.xlu0 %2173 }
0x1323   :  { %v4844_v41 = vmul.f32 %v4150_v22, %v2174_v42 }
0x1325   :  { %2347 = vrot.lane.b32.xlu0 %v4844_v41, %s4336_s10 }
0x1326   :  { %v2343_v43 = vpop.permute.xlu1 %2342 }
0x1327   :  { %v2345_v45 = vmul.f32 %v4152_v25, %v2343_v43  ;;  %v2866_v25 = vld [vmem:[#allocation8 + $0x8] sm:$0xff] }
0x1328   :  { %v4015_v26 = vpack.c.bf16 %v2866_v25, %v2865_v13 }
0x1329   :  { %2422 = vrot.lane.b32.xlu1 %v2345_v45, %s4336_s10  ;;  %2591 = vrot.lane.b32.xlu0 %v4229_v44, %s4343_s30 }
0x1397   :  { %v4852_v48 = vpop.permute.xlu0 %2347 }
0x1398   :  { %3780 = vmatmul.mubr.msk.f32.vlgmr.msra.gmra.mrb[26].mxu0 %vm98_vm3, %v4852_v48 }
0x1399   :  { %3999 = vmatpush3.bf16.msra.mxu0 %v4476_v6  ;;  %3801 = vmatprep.mubr.msk.f32.mxu0 %vm4334_vm0, %v4333_v2 }
0x139a   :  { %4000 = vmatprep.subr.bf16.mxu0 %v4332_v1 }
0x139b   :  { %v2423_v49 = vpop.permute.xlu1 %2422  ;;  %v2592_v52 = vpop.permute.xlu0 %2591 }
0x139c   :  { %3791 = vmatmul.mubr.msk.f32.vlgmr.msra.gmra.mrb[26].mxu1 %vm98_vm3, %v2423_v49 }
0x139d   :  { %4002 = vmatpush3.bf16.msra.mxu0 %v4494_v10  ;;  %3805 = vmatpush3.msk.msra.mxu1 %vm176_vm1, %v4230_v51 }
0x139e   :  { %3806 = vmatprep.mubr.msk.f32.mxu1 %vm4334_vm0, %v4333_v2  ;;  %4003 = vmatprep.subr.bf16.mxu1 %v4332_v1 }
0x139f   :  { %4009 = vmatprep.subr.bf16.mxu0 %v4332_v1 }
0x13a0   :  { %3802 = vmatmul.mubr.msk.f32.vlgmr.msra.gmra.mrb[28].mxu0 %vm98_vm3, %v2423_v49  ;;  %3807 = vmatmul.mubr.msk.f32.vlgmr.msra.gmra.mrb[28].mxu1 %vm172_vm2, %v2592_v52 }
0x13a1   :  { %4005 = vmatpush3.bf16.msra.mxu1 %v4519_v31  ;;  %4011 = vmatpush3.bf16.msra.mxu0 %v4521_v35 }
0x13a2   :  { %4006 = vmatprep.subr.bf16.mxu1 %v4332_v1  ;;  %3817 = vmatprep.mubr.msk.f32.mxu1 %vm4334_vm0, %v4333_v2 }
0x13a3   :  { %4012 = vmatprep.subr.bf16.mxu0 %v4332_v1  ;;  %3828 = vmatprep.mubr.msk.f32.mxu0 %vm4334_vm0, %v4333_v2  ;;  %v4231_v2 = vld [vmem:[%s4995_s3] ss:$0 sm:$0xff] }
0x13a5   :  { %4008 = vmatpush3.bf16.msra.mxu1 %v4524_v38  ;;  %4014 = vmatpush3.bf16.msra.mxu0 %v4528_v39 }
0x13a6   :  { %4016 = vmatprep.subr.bf16.mxu1 %v4015_v26 }
0x146b   :  { %v2417_v6 = vpop.f32.mrb[26].mxu0 }
0x146c   :  { %v3781_v10 = vpop.f32.mrb[27].mxu0 }
0x146f   :  { %v2492_v53 = vpop.f32.mrb[26].mxu1 }
0x1470   :  { %v2493_v31 = vadd.f32 %v2492_v53, %v2417_v6  ;;  %v3792_v9 = vpop.f32.mrb[27].mxu1  ;;  %v4232_v6 = vld [vmem:[%s4998_s6] ss:$0 sm:$0xff] }
0x1471   :  { %v4935_v53 = vld [vmem:[%s5000_s8] ss:$0 sm:$0xff]  ;;  %s4345_s8 = smov [#allocation9]  }
0x1472   :  { %v2496_v35 = vadd.f32 %v4567_v47, %v2493_v31 }
0x1473   :  { %v2587_v8 = vpop.f32.mrb[28].mxu0  ;;  %v2661_v55 = vpop.f32.mrb[28].mxu1 }
0x1474   :  { %4157 = vtanh.f32 %v2496_v35  ;;  %v3803_v56 = vpop.f32.mrb[29].mxu0  ;;  %v2662_v58 = vadd.f32 %v2661_v55, %v2587_v8  ;;  %v3808_v1 = vpop.f32.mrb[29].mxu1  ;;  %v3341_v60 = vmul.f32 -1.442695, %v2496_v35 }
0x1476   :  { %v2665_v38 = vadd.f32 %v4231_v2, %v2662_v58 }
0x1478   :  { %4159 = vtanh.f32 %v2665_v38  ;;  %v3345_v47 = vmul.f32 -1.442695, %v2665_v38 }
0x1479   :  { %4161 = vpow2.f32 %v3341_v60 }
0x147a   :  { %4163 = vpow2.f32 %v3345_v47 }
0x147e   :  { %v4158_v39 = vpop.eup %4157 }
0x147f   :  { %2506 = vrot.lane.b32.xlu1 %v4158_v39, %s4335_s27 }
0x1482   :  { %v4160_v59 = vpop.eup %4159 }
0x1483   :  { %2675 = vrot.lane.b32.xlu0 %v4160_v59, %s4335_s27  ;;  %v4162_v62 = vpop.eup %4161 }
0x1484   :  { %v2500_v63 = vadd.f32 1.0, %v4162_v62  ;;  %v4164_v3 = vpop.eup %4163 }
0x1485   :  { %v2669_v4 = vadd.f32 1.0, %v4164_v3 }
0x1486   :  { %4165 = vrcp.f32 %v2500_v63 }
0x1487   :  { %4167 = vrcp.f32 %v2669_v4 }
0x1490   :  { %v4166_v5 = vpop.eup %4165 }
0x1491   :  { %v4168_v14 = vpop.eup %4167  ;;  %v2504_v18 = vmul.f32 %v4166_v5, %v4835_v32 }
0x1492   :  { %v2673_v21 = vmul.f32 %v4168_v14, %v4839_v36  ;;  %v2867_v36 = vld [vmem:[#allocation8 + $0x10] sm:$0xff] }
0x1493   :  { %v4019_v40 = vpack.c.bf16 %v2868_v37, %v2867_v36 }
0x14f1   :  { %v2507_v7 = vpop.permute.xlu1 %2506 }
0x14f2   :  { %v2509_v11 = vmul.f32 %v4166_v5, %v2507_v7 }
0x14f4   :  { %2511 = vrot.lane.b32.xlu1 %v2509_v11, %s4336_s10 }
0x14f5   :  { %v2676_v15 = vpop.permute.xlu0 %2675 }
0x14f6   :  { %v2678_v17 = vmul.f32 %v4168_v14, %v2676_v15 }
0x14f8   :  { %2680 = vrot.lane.b32.xlu0 %v2678_v17, %s4336_s10 }
0x1566   :  { %v2512_v19 = vpop.permute.xlu1 %2511 }
0x1567   :  { %v4891_v20 = vadd.f32 %v2512_v19, %v2504_v18 }
0x1569   :  { %4169 = vtanh.f32 %v4891_v20 }
0x156a   :  { %v2681_v22 = vpop.permute.xlu0 %2680 }
0x156b   :  { %v2683_v23 = vadd.f32 %v2681_v22, %v2673_v21 }
0x156d   :  { %4171 = vtanh.f32 %v2683_v23 }
0x1573   :  { %v4170_v28 = vpop.eup %4169 }
0x1574   :  { %2517 = vrot.lane.b32.xlu1 %v4170_v28, %s4335_s27 }
0x1577   :  { %v4172_v29 = vpop.eup %4171 }
0x1578   :  { %2686 = vrot.lane.b32.xlu0 %v4172_v29, %s4335_s27 }
0x15e6   :  { %v2518_v30 = vpop.permute.xlu1 %2517 }
0x15e7   :  { %v4897_v32 = vmul.f32 %v4166_v5, %v2518_v30 }
0x15e9   :  { %2691 = vrot.lane.b32.xlu1 %v4897_v32, %s4336_s10 }
0x15ea   :  { %v2687_v33 = vpop.permute.xlu0 %2686 }
0x15eb   :  { %v2689_v34 = vmul.f32 %v4168_v14, %v2687_v33 }
0x15ed   :  { %2766 = vrot.lane.b32.xlu0 %v2689_v34, %s4336_s10 }
0x165b   :  { %v2692_v42 = vpop.permute.xlu1 %2691 }
0x165c   :  { %3818 = vmatmul.mubr.msk.f32.vlgmr.msra.gmra.mrb[30].mxu1 %vm98_vm3, %v2692_v42 }
0x165d   :  { %4018 = vmatpush3.bf16.msra.mxu1 %v4015_v26  ;;  %3839 = vmatprep.mubr.msk.f32.mxu1 %vm98_vm3, %v4590_v27  ;;  %v2994_v27 = vld [vmem:[%s5001_s9] sm:$0xff] }
0x165e   :  { %4020 = vmatprep.subr.bf16.mxu1 %v4019_v40 }
0x165f   :  { %v2767_v43 = vpop.permute.xlu0 %2766 }
0x1660   :  { %3829 = vmatmul.mubr.msk.f32.vlgmr.msra.gmra.mrb[30].mxu0 %vm98_vm3, %v2767_v43 }
0x1661   :  { %4022 = vmatpush3.bf16.msra.mxu1 %v4019_v40 }
0x1664   :  { %3840 = vmatmul.mubr.msk.f32.vlgmr.msra.gmra.mrb[32].mxu1 %vm98_vm3, %v4642_v16  ;;  %v2995_v16 = vld [vmem:[%s5001_s9 + $0x8] sm:$0xff] }
0x1665   :  { %3842 = vmatprep.mubr.msk.f32.mxu1 %vm98_vm3, %v4694_v0  ;;  %v4023_v0 = vpack.c.bf16 %v2995_v16, %v2994_v27  ;;  %v3358_v16 = vld [vmem:[#allocation2] ss:$0 sm:$0xff] }
0x1667   :  { %4024 = vmatprep.subr.bf16.mxu0 %v4023_v0 }
0x1668   :  { %3843 = vmatmul.mubr.msk.f32.gmra.mrb[34].mxu1 %vm98_vm3, %v4746_v57  ;;  %4026 = vmatpush3.bf16.msra.mxu0 %v4023_v0  ;;  %v2996_v57 = vld [vmem:[%s5001_s9 + $0x10] sm:$0xff] }
0x1669   :  { %3845 = vmatprep.mubr.msk.f32.mxu1 %vm98_vm3, %v4798_v50  ;;  %v2997_v50 = vld [vmem:[%s5001_s9 + $0x18] sm:$0xff]  ;;  %s3283_s9 = sshll.u32 %s4345_s8, 4  ;;  %s3284_s9 = int_to_ptr.vmem [resolvable:$true] %s3283_s9 }
0x166a   :  { %v4027_v45 = vpack.c.bf16 %v2997_v50, %v2996_v57  ;;  %p4304_p11 = scmp.lt.s32.totalorder %s3284_s9, %s3284_s9 }
0x166c   :  { %3846 = vmatmul.mubr.msk.f32.gmra.mrb[36].mxu1 %vm98_vm3, %v4852_v48  ;;  %4028 = vmatprep.subr.bf16.mxu0 %v4027_v45 }
0x166d   :  { %3848 = vmatprep.mubr.msk.f32.mxu1 %vm98_vm3, %v2692_v42  ;;  %4030 = vmatpush3.bf16.msra.mxu0 %v4027_v45 }
0x172f   :  { %v2761_v44 = vpop.f32.mrb[30].mxu1 }
0x1730   :  { %v3819_v48 = vpop.f32.mrb[31].mxu1 }
0x1733   :  { %v2836_v49 = vpop.f32.mrb[30].mxu0 }
0x1734   :  { %v2837_v51 = vadd.f32 %v2836_v49, %v2761_v44  ;;  %v3830_v52 = vpop.f32.mrb[31].mxu0 }
0x1736   :  { %v2840_v10 = vadd.f32 %v4232_v6, %v2837_v51 }
0x1737   :  { %v3841_v31 = vpop.f32.mrb[32].mxu1 }
0x1738   :  { %4173 = vtanh.f32 %v2840_v10  ;;  %v2947_v9 = vpop.f32.mrb[33].mxu1  ;;  %v2953_v35 = vadd.f32 %v3841_v31, %v4935_v53  ;;  %v3348_v7 = vmul.f32 -1.442695, %v2840_v10 }
0x1739   :  { %v2948_v8 = vadd.f32 %v4935_v53, %v2947_v9 }
0x173b   :  { %v3844_v55 = vpop.f32.mrb[34].mxu1  ;;  %4175 = vtanh.f32 %v2948_v8 }
0x173c   :  { %v2957_v56 = vpop.f32.mrb[35].mxu1  ;;  %4177 = vtanh.f32 %v2953_v35  ;;  %v2963_v58 = vadd.f32 %v3844_v55, %v4935_v53 }
0x173d   :  { %v2958_v1 = vadd.f32 %v4935_v53, %v2957_v56 }
0x173f   :  { %4179 = vtanh.f32 %v2958_v1  ;;  %v3847_v2 = vpop.f32.mrb[36].mxu1 }
0x1740   :  { %v2967_v38 = vpop.f32.mrb[37].mxu1  ;;  %4181 = vtanh.f32 %v2963_v58  ;;  %v2973_v39 = vadd.f32 %v3847_v2, %v4935_v53 }
0x1741   :  { %v2968_v59 = vadd.f32 %v4935_v53, %v2967_v38 }
0x1742   :  { %v4174_v60 = vpop.eup %4173 }
0x1743   :  { %4183 = vtanh.f32 %v2968_v59  ;;  %2850 = vrot.lane.b32.xlu1 %v4174_v60, %s4335_s27 }
0x1744   :  { %4185 = vtanh.f32 %v2973_v39 }
0x1745   :  { %v4176_v47 = vpop.eup %4175  ;;  %4187 = vpow2.f32 %v3348_v7 }
0x1746   :  { %v4178_v62 = vpop.eup %4177  ;;  %3859 = vmatprep.mubr.msk.f32.mxu0 %vm98_vm3, %v4176_v47  ;;  %v4344_v47 = vmov 0  }
0x1747   :  { %3860 = vmatmul.mubr.msk.f32.vlgmr.msra.gmra.mrb[32].mxu0 %vm98_vm3, %v4178_v62  ;;  %4052 = vset.pattern.permute.xlu0 %v4344_v47 }
0x1749   :  { %v4180_v63 = vpop.eup %4179 }
0x174a   :  { %3862 = vmatprep.mubr.msk.f32.mxu0 %vm98_vm3, %v4180_v63  ;;  %v4182_v3 = vpop.eup %4181 }
0x174b   :  { %3863 = vmatmul.mubr.msk.f32.gmra.mrb[34].mxu0 %vm98_vm3, %v4182_v3 }
0x174d   :  { %v4184_v4 = vpop.eup %4183 }
0x174e   :  { %3865 = vmatprep.mubr.msk.f32.mxu0 %vm98_vm3, %v4184_v4  ;;  %v4186_v5 = vpop.eup %4185 }
0x174f   :  { %3866 = vmatmul.mubr.msk.f32.gmra.mrb[36].mxu0 %vm98_vm3, %v4186_v5  ;;  %v4188_v11 = vpop.eup %4187 }
0x1750   :  { %v2844_v14 = vadd.f32 1.0, %v4188_v11 }
0x1752   :  { %4189 = vrcp.f32 %v2844_v14 }
0x175c   :  { %v4190_v15 = vpop.eup %4189 }
0x175d   :  { %v2848_v26 = vmul.f32 %v4190_v15, %v4891_v20 }
0x17b5   :  { %v2851_v17 = vpop.permute.xlu1 %2850 }
0x17b6   :  { %v2853_v18 = vmul.f32 %v4190_v15, %v2851_v17 }
0x17b8   :  { %2855 = vrot.lane.b32.xlu0 %v2853_v18, %s4336_s10 }
0x181a   :  { %v3861_v19 = vpop.f32.mrb[32].mxu0 }
0x181b   :  { %v3095_v21 = vpop.f32.mrb[33].mxu0  ;;  %v3101_v50 = vadd.f32 %v3861_v19, %v3358_v16 }
0x181c   :  { %v3096_v45 = vadd.f32 %v3358_v16, %v3095_v21 }
0x181e   :  { %v3864_v22 = vpop.f32.mrb[34].mxu0  ;;  %v3135_v31 = vsel %vm3134_vm4, %v3096_v45, -inf }
0x181f   :  { %v3105_v23 = vpop.f32.mrb[35].mxu0  ;;  %v3111_v44 = vadd.f32 %v3864_v22, %v3358_v16 }
0x1820   :  { %v3106_v48 = vadd.f32 %v3358_v16, %v3105_v23 }
0x1821   :  { %v3138_v35 = vsel %vm3134_vm4, %v3111_v44, -inf }
0x1822   :  { %v3867_v13 = vpop.f32.mrb[36].mxu0  ;;  %v3137_v58 = vsel %vm3134_vm4, %v3106_v48, -inf }
0x1823   :  { %v3115_v25 = vpop.f32.mrb[37].mxu0  ;;  %v3121_v0 = vadd.f32 %v3867_v13, %v3358_v16 }
0x1824   :  { %v3116_v57 = vadd.f32 %v3358_v16, %v3115_v25 }
0x1825   :  { %v3141_v49 = vsel %vm3134_vm4, %v3121_v0, -inf }
0x1826   :  { %v3139_v51 = vsel %vm3134_vm4, %v3116_v57, -inf }
0x1827   :  { %v3140_v55 = vmax.f32 %v3135_v31, %v3139_v51 }
0x182a   :  { %v2856_v28 = vpop.permute.xlu0 %2855 }
0x182b   :  { %v2858_v29 = vadd.f32 %v2856_v28, %v2848_v26 }
0x182d   :  { %4191 = vtanh.f32 %v2858_v29 }
0x1837   :  { %v4192_v30 = vpop.eup %4191 }
0x1838   :  { %2861 = vrot.lane.b32.xlu1 %v4192_v30, %s4335_s27  ;;  %s4299_s27 = scalar_lea.vmem %s3284_s9, 128 }
0x1839   :  { %p4300_p10 = scmp.ne.s32.totalorder %s3284_s9, %s4299_s27  ;;  %p4305_p12 = scmp.lt.s32.totalorder %s4299_s27, %s4299_s27 }
0x183b   :  { %p4306_p13 = por %p4305_p12, %p4304_p11 }
0x183d   :  { %p4307_p0 = pnand %p4306_p13, %p4300_p10 }
0x18aa   :  { %v2862_v33 = vpop.permute.xlu1 %2861 }
0x18ab   :  { %v4953_v34 = vmul.f32 %v4190_v15, %v2862_v33 }
0x18ad   :  { %2877 = vrot.lane.b32.xlu0 %v4953_v34, %s4336_s10 }
0x191f   :  { %v2878_v36 = vpop.permute.xlu0 %2877 }
0x1920   :  { %3849 = vmatmul.mubr.msk.f32.gmra.mrb[38].mxu1 %vm98_vm3, %v2878_v36 }
0x19f3   :  { %v3850_v37 = vpop.f32.mrb[38].mxu1 }
0x19f4   :  { %v2983_v40 = vadd.f32 %v3850_v37, %v4935_v53  ;;  %v2977_v42 = vpop.f32.mrb[39].mxu1 }
0x19f5   :  { %v2978_v20 = vadd.f32 %v4935_v53, %v2977_v42  ;;  %v3136_v53 = vsel %vm3134_vm4, %v3101_v50, -inf }
0x19f6   :  { %v3142_v8 = vmax.f32 %v3136_v53, %v3141_v49 }
0x19f7   :  { %4193 = vtanh.f32 %v2978_v20 }
0x19f8   :  { %4195 = vtanh.f32 %v2983_v40  ;;  %v3147_v39 = vmax.f32 %v3140_v55, %v3142_v8 }
0x1a01   :  { %v4194_v43 = vpop.eup %4193 }
0x1a02   :  { %v4196_v27 = vpop.eup %4195  ;;  %3868 = vmatprep.mubr.msk.f32.mxu0 %vm98_vm3, %v4194_v43 }
0x1a03   :  { %3869 = vmatmul.mubr.msk.f32.gmra.mrb[38].mxu0 %vm98_vm3, %v4196_v27 }
0x1ad6   :  { %v3870_v52 = vpop.f32.mrb[38].mxu0 }
0x1ad7   :  { %v3131_v6 = vadd.f32 %v3870_v52, %v3358_v16  ;;  %v3125_v10 = vpop.f32.mrb[39].mxu0 }
0x1ad8   :  { %v3126_v9 = vadd.f32 %v3358_v16, %v3125_v10 }
0x1ad9   :  { %v3145_v56 = vsel %vm3134_vm4, %v3131_v6, -inf }
0x1ada   :  { %v3146_v1 = vmax.f32 %v3138_v35, %v3145_v56  ;;  %v3143_v2 = vsel %vm3134_vm4, %v3126_v9, -inf }
0x1adb   :  { %v3144_v38 = vmax.f32 %v3137_v58, %v3143_v2 }
0x1add   :  { %v3148_v59 = vmax.f32 %v3144_v38, %v3146_v1 }
0x1adf   :  { %v3149_v60 = vmax.f32 %v3147_v39, %v3148_v59 }
0x1ae1   :  { %3150 = vmax.xlane.f32.xlu1 %v3149_v60 }
0x1b6e   :  { %v3151_v62 = vpop.xlane.xlu1 %3150 }
0x1b6f   :  { %v3152_v63 = vrot.slane %v3151_v62, 4 }
0x1b71   :  { %v3153_v3 = vmax.f32 %v3151_v62, %v3152_v63 }
0x1b73   :  { %v3154_v4 = vrot.slane %v3153_v3, 2 }
0x1b75   :  { %v3155_v5 = vmax.f32 %v3153_v3, %v3154_v4 }
0x1b77   :  { %v3156_v7 = vrot.slane %v3155_v5, 1 }
0x1b79   :  { %v3157_v11 = vmax.f32 %v3155_v5, %v3156_v7 }
0x1b7b   :  { %4031 = vpush %v3157_v11 }
0x1bac   :  { %s4032_s6 = spop %4031 }
0x1bad   :  { %v3159_v14 = vstv %s4032_s6 }
0x1bae   :  { %v3160_v15 = vsub.f32 %v3096_v45, %v3159_v14  ;;  %v3161_v17 = vsub.f32 %v3101_v50, %v3159_v14  ;;  %v3162_v18 = vsub.f32 %v3106_v48, %v3159_v14  ;;  %v3163_v19 = vsub.f32 %v3111_v44, %v3159_v14 }
0x1baf   :  { %v3164_v23 = vsub.f32 %v3116_v57, %v3159_v14  ;;  %v3165_v25 = vsub.f32 %v3121_v0, %v3159_v14  ;;  %v3166_v28 = vsub.f32 %v3126_v9, %v3159_v14  ;;  %v3167_v30 = vsub.f32 %v3131_v6, %v3159_v14 }
0x1bb0   :  { %v3168_v21 = vmul.f32 1.442695, %v3160_v15  ;;  %v3170_v22 = vmul.f32 1.442695, %v3161_v17  ;;  %v3172_v13 = vmul.f32 1.442695, %v3162_v18 }
0x1bb1   :  { %v3174_v26 = vmul.f32 1.442695, %v3163_v19  ;;  %v3176_v29 = vmul.f32 1.442695, %v3164_v23  ;;  %v3178_v33 = vmul.f32 1.442695, %v3165_v25 }
0x1bb2   :  { %4197 = vpow2.f32 %v3168_v21  ;;  %v3180_v36 = vmul.f32 1.442695, %v3166_v28  ;;  %v3182_v37 = vmul.f32 1.442695, %v3167_v30 }
0x1bb3   :  { %4199 = vpow2.f32 %v3170_v22 }
0x1bb4   :  { %4201 = vpow2.f32 %v3172_v13 }
0x1bb5   :  { %4203 = vpow2.f32 %v3174_v26 }
0x1bb6   :  { %4205 = vpow2.f32 %v3176_v29 }
0x1bb7   :  { %4207 = vpow2.f32 %v3178_v33 }
0x1bb8   :  { %4209 = vpow2.f32 %v3180_v36 }
0x1bb9   :  { %4211 = vpow2.f32 %v3182_v37 }
0x1bbc   :  { %v4198_v40 = vpop.eup %4197 }
0x1bbd   :  { %v4200_v42 = vpop.eup %4199 }
0x1bbe   :  { %v3186_v20 = vadd.f32 %v4200_v42, %v4198_v40  ;;  %v4202_v43 = vpop.eup %4201 }
0x1bbf   :  { %v4204_v16 = vpop.eup %4203 }
0x1bc0   :  { %v3188_v27 = vadd.f32 %v4202_v43, %v3186_v20  ;;  %v4206_v57 = vpop.eup %4205 }
0x1bc1   :  { %v4208_v45 = vpop.eup %4207 }
0x1bc2   :  { %v3190_v0 = vadd.f32 %v4204_v16, %v3188_v27  ;;  %v4210_v48 = vpop.eup %4209 }
0x1bc3   :  { %v4212_v51 = vpop.eup %4211 }
0x1bc4   :  { %v3192_v50 = vadd.f32 %v4206_v57, %v3190_v0 }
0x1bc6   :  { %v3194_v44 = vadd.f32 %v4208_v45, %v3192_v50 }
0x1bc8   :  { %v3196_v49 = vadd.f32 %v4210_v48, %v3194_v44 }
0x1bca   :  { %v3198_v52 = vadd.f32 %v4212_v51, %v3196_v49  ;;  %4213 = vrcp.f32 %v3196_v49 }
0x1bcc   :  { %4215 = vrcp.f32 %v3198_v52 }
0x1bcd   :  { %4217 = vrcp.f32 %v3194_v44 }
0x1bce   :  { %4219 = vrcp.f32 %v3192_v50 }
0x1bcf   :  { %4221 = vrcp.f32 %v3190_v0 }
0x1bd0   :  { %4223 = vrcp.f32 %v3188_v27 }
0x1bd1   :  { %4225 = vrcp.f32 %v3186_v20 }
0x1bd2   :  { %4227 = vrcp.f32 %v4198_v40 }
0x1bd4   :  { %v4214_v6 = vpop.eup %4213 }
0x1bd6   :  { %v4216_v10 = vpop.eup %4215 }
0x1bd7   :  { %v3201_v53 = vmul.f32 %v4216_v10, %v4212_v51  ;;  %v3209_v31 = vadd.f32 %v4216_v10, %v4214_v6  ;;  %v4218_v9 = vpop.eup %4217 }
0x1bd8   :  { %v4220_v55 = vpop.eup %4219 }
0x1bd9   :  { %3204 = vperm.xlu0 %4052, %v3201_v53   ;;  %v3210_v35 = vmul.f32 %v4210_v48, %v3209_v31  ;;  %v3218_v8 = vadd.f32 %v4218_v9, %v3209_v31  ;;  %v4222_v1 = vpop.eup %4221 }
0x1bda   :  { %v4224_v39 = vpop.eup %4223 }
0x1bdb   :  { %v3219_v56 = vmul.f32 %v4208_v45, %v3218_v8  ;;  %v3227_v58 = vadd.f32 %v4220_v55, %v3218_v8  ;;  %v4226_v47 = vpop.eup %4225 }
0x1bdc   :  { %v4228_v3 = vpop.eup %4227 }
0x1bdd   :  { %3213 = vperm.xlu0 %4052, %v3210_v35   ;;  %v3228_v2 = vmul.f32 %v4206_v57, %v3227_v58  ;;  %v3236_v38 = vadd.f32 %v4222_v1, %v3227_v58 }
0x1bdf   :  { %v3237_v59 = vmul.f32 %v4204_v16, %v3236_v38  ;;  %v3245_v60 = vadd.f32 %v4224_v39, %v3236_v38 }
0x1be1   :  { %3222 = vperm.xlu0 %4052, %v3219_v56   ;;  %v3246_v62 = vmul.f32 %v4202_v43, %v3245_v60  ;;  %v3254_v63 = vadd.f32 %v4226_v47, %v3245_v60 }
0x1be3   :  { %v3255_v4 = vmul.f32 %v4200_v42, %v3254_v63  ;;  %v3263_v5 = vadd.f32 %v4228_v3, %v3254_v63 }
0x1be5   :  { %3231 = vperm.xlu0 %4052, %v3228_v2   ;;  %v3264_v7 = vmul.f32 %v4198_v40, %v3263_v5 }
0x1be9   :  { %3240 = vperm.xlu0 %4052, %v3237_v59  }
0x1bed   :  { %3249 = vperm.xlu0 %4052, %v3246_v62  }
0x1bf1   :  { %3258 = vperm.xlu0 %4052, %v3255_v4  }
0x1bf5   :  { %3267 = vperm.xlu0 %4052, %v3264_v7  }
0x1c58   :  { %v3205_v11 = vpop.permute.xlu0 %3204 }
0x1c59   :  { %v3207_v21 = vmul.f32 %v3205_v11, %v4953_v34 }
0x1c5c   :  { %v3214_v14 = vpop.permute.xlu0 %3213 }
0x1c5d   :  { %v3216_v18 = vmul.f32 %v3214_v14, %v4897_v32 }
0x1c5f   :  { %v3217_v23 = vadd.f32 %v3216_v18, %v3207_v21 }
0x1c60   :  { %v3223_v15 = vpop.permute.xlu0 %3222 }
0x1c61   :  { %v3225_v22 = vmul.f32 %v3223_v15, %v4844_v41 }
0x1c63   :  { %v3226_v26 = vadd.f32 %v3225_v22, %v3217_v23 }
0x1c64   :  { %v3232_v17 = vpop.permute.xlu0 %3231 }
0x1c65   :  { %v3234_v13 = vmul.f32 %v3232_v17, %v4792_v46 }
0x1c67   :  { %v3235_v29 = vadd.f32 %v3234_v13, %v3226_v26 }
0x1c68   :  { %v3241_v19 = vpop.permute.xlu0 %3240 }
0x1c69   :  { %v3243_v28 = vmul.f32 %v3241_v19, %v4740_v54 }
0x1c6b   :  { %v3244_v36 = vadd.f32 %v3243_v28, %v3235_v29 }
0x1c6c   :  { %v3250_v25 = vpop.permute.xlu0 %3249 }
0x1c6d   :  { %v3252_v30 = vmul.f32 %v3250_v25, %v4688_v61 }
0x1c6f   :  { %v3253_v32 = vadd.f32 %v3252_v30, %v3244_v36 }
0x1c70   :  { %v3259_v33 = vpop.permute.xlu0 %3258 }
0x1c71   :  { %v3261_v37 = vmul.f32 %v3259_v33, %v4636_v12 }
0x1c73   :  { %v3262_v42 = vadd.f32 %v3261_v37, %v3253_v32 }
0x1c74   :  { %v3268_v40 = vpop.permute.xlu0 %3267 }
0x1c75   :  { %v3270_v34 = vmul.f32 %v3268_v40, %v4584_v24 }
0x1c77   :  { %v3271_v41 = vadd.f32 %v3270_v34, %v3262_v42 }
0x1c79   :  { %3273 = vrot.lane.b32.xlu1 %v3271_v41, %s4336_s10 }
0x1ceb   :  { %v3274_v46 = vpop.permute.xlu1 %3273 }
0x1cec   :  { %3276 = vst.msk [vmem:[#allocation9] sm:$0xff] %vm98_vm3, %v3274_v46 }
0x1ced   :  { %4310 = shalt.err (!%p4307_p0)
}
0x1cee   :  { %s4311_s15 = scalar_lea.hbm %s5003_s11, 128 }
0x1cef   :  { %p4312_p1 = scmp.ne.s32.totalorder %s5003_s11, %s4311_s15  ;;  %p4315_p2 = scmp.lt.u32.totalorder %s4311_s15, %s5003_s11 }
0x1cf1   :  { %p4317_p3 = pnand %p4315_p2, %p4312_p1 }
0x1cf3   :  { %4320 = shalt.err (!%p4317_p3)
}
0x1cf4   :  { %3286 = dma.vmem_to_hbm [thread:$0]  %s3284_s9, 128, %s5003_s11, [#allocation5]  }
0x1cf5   :  { %4325 = dma.done.wait [#allocation5], 128  }
0x1cf6   :  { %4326 = vsyncadd [#allocation5], 4294967168 }
0x1cf7   :  { %3290 = vsyncpa [#allocation4], 1 }
0x1cf8   :  { %3291 = vsyncpa [#allocation7], 1 }
0x1cf9   :  { %3292 = vsyncpa [#allocation5], 1 }

</bundles_post_ra>
